<compile_context>
chip_gen: v6e
topology: v6e:2x2x1
jax: 0.10.0
libtpu: 0.0.40
codegen_flags: <defaults>
</compile_context>

<pallas_src>
import jax
import jax.numpy as jnp
from jax.experimental import pallas as pl
from jax.experimental.pallas import tpu as pltpu


# ------------------------------ fused kernel ------------------------------- #

def _cnn_fused_kernel(x_ref, w1_ref, b1_ref, w2_ref, b2_ref,
                      wf1_ref, bf1_ref, wf2_ref, bf2_ref, o_ref):
    f32, bf16 = jnp.float32, jnp.bfloat16

    TB = x_ref.shape[0] // 10          # images in this batch tile
    L1 = TB * 10 - 2                   # conv1 output rows (incl. seam garbage)
    L2 = TB * 10 - 4                   # conv2 output rows (incl. seam garbage)

    x = x_ref[...]                     # (TB*10, 10) f32, rows = b*10 + y

    # conv1 + bias + ReLU: 3 banded dots.  acc1[r, ox*32+c], r = b*10 + oy.
    acc1 = None
    for dy in range(3):
        lhs = x[dy:dy + L1, :].astype(bf16)                       # (L1, 10)
        d = jnp.dot(lhs, w1_ref[dy], preferred_element_type=f32)  # (L1, 256)
        acc1 = d if acc1 is None else acc1 + d
    h1 = jnp.maximum(acc1 + b1_ref[...], 0.0)                     # (L1, 256)

    # conv2 + bias + ReLU: 3 banded dots.  acc2[r, ox*64+c], r = b*10 + oy.
    acc2 = None
    for dy in range(3):
        lhs = h1[dy:dy + L2, :].astype(bf16)                      # (L2, 256)
        d = jnp.dot(lhs, w2_ref[dy], preferred_element_type=f32)  # (L2, 384)
        acc2 = d if acc2 is None else acc2 + d
    h2 = jnp.maximum(acc2 + b2_ref[...], 0.0).astype(bf16)        # (L2, 384)

    # fc1 + bias + ReLU: one block-column dot, then VPU diagonal sum over h.
    # R[b*10+h, h*128+n] is the h-th partial contribution to logit-hidden n.
    R = jnp.dot(h2, wf1_ref[...], preferred_element_type=f32)     # (L2, 768)
    rows = []
    for b in range(TB):
        z = R[b * 10:b * 10 + 1, 0:128]
        for h in range(1, 6):
            z = z + R[b * 10 + h:b * 10 + h + 1, h * 128:(h + 1) * 128]
        rows.append(z)
    z = jnp.concatenate(rows, axis=0) if TB > 1 else rows[0]      # (TB, 128)
    h3 = jnp.maximum(z + bf1_ref[...], 0.0).astype(bf16)          # (TB, 128)

    # fc2 (output padded to 128 lanes for a lane-dense store).
    out = jnp.dot(h3, wf2_ref[...], preferred_element_type=f32) + bf2_ref[...]
    o_ref[...] = out.astype(o_ref.dtype)


# --------------------------- parameter preparation ------------------------- #

def prepare_params(params):
    """One-time host-side layout prep: banded (block-Toeplitz) conv weights,
    tiled biases, fc1 block-column permutation (torch (C,H,W)-flatten order),
    fc2 lane padding, bf16 casts."""
    f32, bf16 = jnp.float32, jnp.bfloat16
    c1w, c1b = params["conv1_w"], params["conv1_b"]      # (32,1,3,3), (32,)
    c2w, c2b = params["conv2_w"], params["conv2_b"]      # (64,32,3,3), (64,)
    f1w, f1b = params["fc1_w"], params["fc1_b"]          # (128,2304), (128,)
    f2w, f2b = params["fc2_w"], params["fc2_b"]          # (10,128), (10,)

    # conv1 banded weights: (3, 10, 256); band[dy][ox+dx, ox*32+c] = w[c,0,dy,dx]
    w1_band = jnp.stack([
        sum(jnp.kron(jnp.eye(10, 8, k=-dx, dtype=f32),
                     c1w[:, 0, dy, dx][None, :]) for dx in range(3))
        for dy in range(3)])
    b1_t = jnp.tile(c1b, 8).reshape(1, 256)

    # conv2 banded weights: (3, 256, 384);
    # band[dy][(ox+dx)*32+cin, ox*64+cout] = w[cout,cin,dy,dx]
    w2_band = jnp.stack([
        sum(jnp.kron(jnp.eye(8, 6, k=-dx, dtype=f32),
                     c2w[:, :, dy, dx].T) for dx in range(3))
        for dy in range(3)])
    b2_t = jnp.tile(c2b, 6).reshape(1, 384)

    # fc1: torch (c,h,w) flatten order -> kernel's (h, w*64+c) rows, laid out
    # block-column along N: wf1_bc[w*64+c, h*128+n] = f1w[n, c*36 + h*6 + w].
    wf1_h = (f1w.T.reshape(64, 6, 6, 128)
             .transpose(1, 2, 0, 3)
             .reshape(6, 384, 128))
    wf1_bc = wf1_h.transpose(1, 0, 2).reshape(384, 768)
    bf1 = f1b.reshape(1, 128)

    # fc2: pad 10 output columns to 128 lanes.
    wf2 = jnp.zeros((128, 128), f32).at[:, :10].set(f2w.T)
    bf2 = jnp.zeros((1, 128), f32).at[0, :10].set(f2b)

    return {
        "w1": w1_band.astype(bf16), "b1": b1_t.astype(f32),
        "w2": w2_band.astype(bf16), "b2": b2_t.astype(f32),
        "wf1": wf1_bc.astype(bf16), "bf1": bf1.astype(f32),
        "wf2": wf2.astype(bf16),    "bf2": bf2.astype(f32),
    }


# -------------------------------- forward ---------------------------------- #

def cnn_forward(prepped, x_nchw, tile_b=None):
    """x_nchw: (B, 1, 10, 10)  ->  logits (B, 10)."""
    B = x_nchw.shape[0]
    assert x_nchw.shape[1:] == (1, 10, 10), x_nchw.shape

    # Default: whole batch in one grid step (no per-step overhead, no
    # duplicated weight DMA).  For large B, pass tile_b (multiple of 8) to tile.
    tile_b = B if tile_b is None else tile_b
    assert B % tile_b == 0
    assert tile_b == B or tile_b % 8 == 0, "tiled tile_b must be a multiple of 8"
    n_tiles = B // tile_b

    # Batch stacked on the sublane (M) axis with stride 10: rows = b*10 + y.
    x2d = x_nchw.reshape(B * 10, 10).astype(jnp.float32)

    L1, L2 = tile_b * 10 - 2, tile_b * 10 - 4
    flops = 2 * n_tiles * (3 * L1 * 10 * 256 + 3 * L2 * 256 * 384
                           + L2 * 384 * 768 + tile_b * 128 * 128)
    bytes_accessed = int(
        x2d.size * 4 + B * 128 * 4
        + sum(int(v.size) * v.dtype.itemsize for v in prepped.values()))

    grid_spec = pltpu.PrefetchScalarGridSpec(
        num_scalar_prefetch=0,
        grid=(n_tiles,),
        in_specs=[
            pl.BlockSpec((tile_b * 10, 10), lambda i: (i, 0)),   # batch-tile rows
            pl.BlockSpec((3, 10, 256), lambda i: (0, 0, 0)),     # conv1 banded w
            pl.BlockSpec((1, 256), lambda i: (0, 0)),            # conv1 bias
            pl.BlockSpec((3, 256, 384), lambda i: (0, 0, 0)),    # conv2 banded w
            pl.BlockSpec((1, 384), lambda i: (0, 0)),            # conv2 bias
            pl.BlockSpec((384, 768), lambda i: (0, 0)),          # fc1 block-col w
            pl.BlockSpec((1, 128), lambda i: (0, 0)),            # fc1 bias
            pl.BlockSpec((128, 128), lambda i: (0, 0)),          # fc2 w (padded)
            pl.BlockSpec((1, 128), lambda i: (0, 0)),            # fc2 bias (padded)
        ],
        out_specs=pl.BlockSpec((tile_b, 128), lambda i: (i, 0)),
    )

    out = pl.pallas_call(
        _cnn_fused_kernel,
        out_shape=jax.ShapeDtypeStruct((B, 128), jnp.float32),
        grid_spec=grid_spec,
        compiler_params=pltpu.CompilerParams(
            dimension_semantics=("parallel",)),
        cost_estimate=pl.CostEstimate(flops=flops, transcendentals=0,
                                      bytes_accessed=bytes_accessed),
    )(x2d, prepped["w1"], prepped["b1"], prepped["w2"], prepped["b2"],
      prepped["wf1"], prepped["bf1"], prepped["wf2"], prepped["bf2"])

    return out[:, :10]


# ------------------------------- references -------------------------------- #

def init_params(key):
    ks = jax.random.split(key, 8)

    def w(k, shape, scale):
        return (scale * jax.random.normal(k, shape)).astype(jnp.float32)

    return {
        "conv1_w": w(ks[0], (32, 1, 3, 3), 0.10), "conv1_b": w(ks[1], (32,), 0.10),
        "conv2_w": w(ks[2], (64, 32, 3, 3), 0.05), "conv2_b": w(ks[3], (64,), 0.05),
        "fc1_w":   w(ks[4], (128, 64 * 6 * 6), 0.02), "fc1_b": w(ks[5], (128,), 0.02),
        "fc2_w":   w(ks[6], (10, 128), 0.05), "fc2_b":   w(ks[7], (10,), 0.05),
    }


def reference_forward_f32(params, x):
    """Pure-JAX f32 reference (PyTorch-faithful semantics)."""
    def conv(h, w, b):
        dn = jax.lax.conv_dimension_numbers(h.shape, w.shape, ("NCHW", "OIHW", "NCHW"))
        h = jax.lax.conv_general_dilated(h, w, (1, 1), "VALID", dimension_numbers=dn)
        return jnp.maximum(h + b[None, :, None, None], 0.0)

    h = conv(x, params["conv1_w"], params["conv1_b"])
    h = conv(h, params["conv2_w"], params["conv2_b"])
    flat = h.reshape(h.shape[0], -1)
    h = jnp.maximum(flat @ params["fc1_w"].T + params["fc1_b"], 0.0)
    return h @ params["fc2_w"].T + params["fc2_b"]


def reference_forward_bf16(params, x):
    """Reference that mirrors the kernel's numerics (bf16 inputs, f32 accum)."""
    bf16, f32 = jnp.bfloat16, jnp.float32

    def conv(h, w, b):
        dn = jax.lax.conv_dimension_numbers(h.shape, w.shape, ("NCHW", "OIHW", "NCHW"))
        o = jax.lax.conv_general_dilated(h.astype(bf16), w.astype(bf16), (1, 1),
                                         "VALID", dimension_numbers=dn,
                                         preferred_element_type=f32)
        return jnp.maximum(o + b[None, :, None, None], 0.0)

    h = conv(x, params["conv1_w"], params["conv1_b"])
    h = conv(h, params["conv2_w"], params["conv2_b"])
    flat = h.reshape(h.shape[0], -1)
    h = jnp.maximum(jnp.dot(flat.astype(bf16), params["fc1_w"].T.astype(bf16),
                            preferred_element_type=f32) + params["fc1_b"], 0.0)
    return jnp.dot(h.astype(bf16), params["fc2_w"].T.astype(bf16),
                   preferred_element_type=f32) + params["fc2_b"]


if __name__ == "__main__":
    key = jax.random.PRNGKey(0)
    kx, kp = jax.random.split(key)
    x = jax.random.normal(kx, (2, 1, 10, 10), dtype=jnp.float32)
    params = init_params(kp)

    prepped = prepare_params(params)                 # one-time layout prep
    fused = jax.jit(cnn_forward)

    out = jax.block_until_ready(fused(prepped, x))
    assert out.shape == (2, 10), out.shape

    # Tight check vs a numerics-matched (bf16-input / f32-accumulate) reference:
    # catches any banded-weight / permutation / batch-stacking regression.
    ref_bf16 = reference_forward_bf16(params, x)
    assert jnp.allclose(out, ref_bf16, atol=1e-3, rtol=1e-2), "mismatch vs bf16 ref"

    # Looser check vs the full-f32 PyTorch-faithful reference (bf16 rounding only).
    ref_f32 = reference_forward_f32(params, x)
    assert jnp.allclose(out, ref_f32, atol=5e-3, rtol=2e-2), "mismatch vs f32 ref"

    print("KERNEL_OK")
</pallas_src>

<mosaic_0001>
module attributes {stable_mosaic.version = 11 : i64} {
  func.func @_cnn_fused_kernel(%arg0: i32, %arg1: memref<20x10xf32, #tpu.memory_space<vmem>>, %arg2: memref<3x10x256xbf16, #tpu.memory_space<vmem>>, %arg3: memref<1x256xf32, #tpu.memory_space<vmem>>, %arg4: memref<3x256x384xbf16, #tpu.memory_space<vmem>>, %arg5: memref<1x384xf32, #tpu.memory_space<vmem>>, %arg6: memref<384x768xbf16, #tpu.memory_space<vmem>>, %arg7: memref<1x128xf32, #tpu.memory_space<vmem>>, %arg8: memref<128x128xbf16, #tpu.memory_space<vmem>>, %arg9: memref<1x128xf32, #tpu.memory_space<vmem>>, %arg10: memref<2x128xf32, #tpu.memory_space<vmem>>) attributes {dimension_semantics = [#tpu.dimension_semantics<parallel>], iteration_bounds = array<i64: 1>, scalar_prefetch = 0 : i64, scratch_operands = 0 : i64, tpu.core_type = #tpu.core_type<tc>, window_params = [{transform_indices = @transform_0, window_bounds = array<i64: 20, 10>}, {pipeline_mode = #tpu.pipeline_mode<synchronous>, transform_indices = @transform_1, window_bounds = array<i64: 3, 10, 256>}, {pipeline_mode = #tpu.pipeline_mode<synchronous>, transform_indices = @transform_2, window_bounds = array<i64: 1, 256>}, {pipeline_mode = #tpu.pipeline_mode<synchronous>, transform_indices = @transform_3, window_bounds = array<i64: 3, 256, 384>}, {pipeline_mode = #tpu.pipeline_mode<synchronous>, transform_indices = @transform_4, window_bounds = array<i64: 1, 384>}, {pipeline_mode = #tpu.pipeline_mode<synchronous>, transform_indices = @transform_5, window_bounds = array<i64: 384, 768>}, {pipeline_mode = #tpu.pipeline_mode<synchronous>, transform_indices = @transform_6, window_bounds = array<i64: 1, 128>}, {pipeline_mode = #tpu.pipeline_mode<synchronous>, transform_indices = @transform_7, window_bounds = array<i64: 128, 128>}, {pipeline_mode = #tpu.pipeline_mode<synchronous>, transform_indices = @transform_8, window_bounds = array<i64: 1, 128>}, {transform_indices = @transform_9, window_bounds = array<i64: 2, 128>}]} {
    %c0 = arith.constant 0 : index
    %c0_0 = arith.constant 0 : index
    %0 = vector.load %arg1[%c0, %c0_0] : memref<20x10xf32, #tpu.memory_space<vmem>>, vector<20x10xf32>
    %1 = vector.extract_strided_slice %0 {offsets = [0, 0], sizes = [18, 10], strides = [1, 1]} : vector<20x10xf32> to vector<18x10xf32>
    %2 = arith.truncf %1 : vector<18x10xf32> to vector<18x10xbf16>
    %c0_1 = arith.constant 0 : index
    %c0_2 = arith.constant 0 : index
    %c0_3 = arith.constant 0 : index
    %3 = vector.load %arg2[%c0_1, %c0_2, %c0_3] : memref<3x10x256xbf16, #tpu.memory_space<vmem>>, vector<1x10x256xbf16>
    %4 = vector.shape_cast %3 : vector<1x10x256xbf16> to vector<10x256xbf16>
    %cst = arith.constant dense<0.000000e+00> : vector<18x256xf32>
    %5 = tpu.matmul %2, %4, %cst {dimension_numbers = #tpu.dot_dimension_numbers<[1], [0], [0], [1], [0, 0, 1, 1], [], []>} : vector<18x10xbf16>, vector<10x256xbf16>, vector<18x256xf32> -> vector<18x256xf32>
    %6 = vector.extract_strided_slice %0 {offsets = [1, 0], sizes = [18, 10], strides = [1, 1]} : vector<20x10xf32> to vector<18x10xf32>
    %7 = arith.truncf %6 : vector<18x10xf32> to vector<18x10xbf16>
    %c1 = arith.constant 1 : index
    %c0_4 = arith.constant 0 : index
    %c0_5 = arith.constant 0 : index
    %8 = vector.load %arg2[%c1, %c0_4, %c0_5] : memref<3x10x256xbf16, #tpu.memory_space<vmem>>, vector<1x10x256xbf16>
    %9 = vector.shape_cast %8 : vector<1x10x256xbf16> to vector<10x256xbf16>
    %cst_6 = arith.constant dense<0.000000e+00> : vector<18x256xf32>
    %10 = tpu.matmul %7, %9, %cst_6 {dimension_numbers = #tpu.dot_dimension_numbers<[1], [0], [0], [1], [0, 0, 1, 1], [], []>} : vector<18x10xbf16>, vector<10x256xbf16>, vector<18x256xf32> -> vector<18x256xf32>
    %11 = arith.addf %5, %10 : vector<18x256xf32>
    %12 = vector.extract_strided_slice %0 {offsets = [2, 0], sizes = [18, 10], strides = [1, 1]} : vector<20x10xf32> to vector<18x10xf32>
    %13 = arith.truncf %12 : vector<18x10xf32> to vector<18x10xbf16>
    %c2 = arith.constant 2 : index
    %c0_7 = arith.constant 0 : index
    %c0_8 = arith.constant 0 : index
    %14 = vector.load %arg2[%c2, %c0_7, %c0_8] : memref<3x10x256xbf16, #tpu.memory_space<vmem>>, vector<1x10x256xbf16>
    %15 = vector.shape_cast %14 : vector<1x10x256xbf16> to vector<10x256xbf16>
    %cst_9 = arith.constant dense<0.000000e+00> : vector<18x256xf32>
    %16 = tpu.matmul %13, %15, %cst_9 {dimension_numbers = #tpu.dot_dimension_numbers<[1], [0], [0], [1], [0, 0, 1, 1], [], []>} : vector<18x10xbf16>, vector<10x256xbf16>, vector<18x256xf32> -> vector<18x256xf32>
    %17 = arith.addf %11, %16 : vector<18x256xf32>
    %c0_10 = arith.constant 0 : index
    %c0_11 = arith.constant 0 : index
    %18 = vector.load %arg3[%c0_10, %c0_11] : memref<1x256xf32, #tpu.memory_space<vmem>>, vector<1x256xf32>
    %19 = vector.broadcast %18 : vector<1x256xf32> to vector<18x256xf32>
    %20 = arith.addf %17, %19 : vector<18x256xf32>
    %cst_12 = arith.constant 0.000000e+00 : f32
    %21 = vector.broadcast %cst_12 : f32 to vector<18x256xf32>
    %22 = arith.maximumf %20, %21 : vector<18x256xf32>
    %23 = vector.extract_strided_slice %22 {offsets = [0, 0], sizes = [16, 256], strides = [1, 1]} : vector<18x256xf32> to vector<16x256xf32>
    %24 = arith.truncf %23 : vector<16x256xf32> to vector<16x256xbf16>
    %c0_13 = arith.constant 0 : index
    %c0_14 = arith.constant 0 : index
    %c0_15 = arith.constant 0 : index
    %25 = vector.load %arg4[%c0_13, %c0_14, %c0_15] : memref<3x256x384xbf16, #tpu.memory_space<vmem>>, vector<1x256x384xbf16>
    %26 = vector.shape_cast %25 : vector<1x256x384xbf16> to vector<256x384xbf16>
    %cst_16 = arith.constant dense<0.000000e+00> : vector<16x384xf32>
    %27 = tpu.matmul %24, %26, %cst_16 {dimension_numbers = #tpu.dot_dimension_numbers<[1], [0], [0], [1], [0, 0, 1, 1], [], []>} : vector<16x256xbf16>, vector<256x384xbf16>, vector<16x384xf32> -> vector<16x384xf32>
    %28 = vector.extract_strided_slice %22 {offsets = [1, 0], sizes = [16, 256], strides = [1, 1]} : vector<18x256xf32> to vector<16x256xf32>
    %29 = arith.truncf %28 : vector<16x256xf32> to vector<16x256xbf16>
    %c1_17 = arith.constant 1 : index
    %c0_18 = arith.constant 0 : index
    %c0_19 = arith.constant 0 : index
    %30 = vector.load %arg4[%c1_17, %c0_18, %c0_19] : memref<3x256x384xbf16, #tpu.memory_space<vmem>>, vector<1x256x384xbf16>
    %31 = vector.shape_cast %30 : vector<1x256x384xbf16> to vector<256x384xbf16>
    %cst_20 = arith.constant dense<0.000000e+00> : vector<16x384xf32>
    %32 = tpu.matmul %29, %31, %cst_20 {dimension_numbers = #tpu.dot_dimension_numbers<[1], [0], [0], [1], [0, 0, 1, 1], [], []>} : vector<16x256xbf16>, vector<256x384xbf16>, vector<16x384xf32> -> vector<16x384xf32>
    %33 = arith.addf %27, %32 : vector<16x384xf32>
    %34 = vector.extract_strided_slice %22 {offsets = [2, 0], sizes = [16, 256], strides = [1, 1]} : vector<18x256xf32> to vector<16x256xf32>
    %35 = arith.truncf %34 : vector<16x256xf32> to vector<16x256xbf16>
    %c2_21 = arith.constant 2 : index
    %c0_22 = arith.constant 0 : index
    %c0_23 = arith.constant 0 : index
    %36 = vector.load %arg4[%c2_21, %c0_22, %c0_23] : memref<3x256x384xbf16, #tpu.memory_space<vmem>>, vector<1x256x384xbf16>
    %37 = vector.shape_cast %36 : vector<1x256x384xbf16> to vector<256x384xbf16>
    %cst_24 = arith.constant dense<0.000000e+00> : vector<16x384xf32>
    %38 = tpu.matmul %35, %37, %cst_24 {dimension_numbers = #tpu.dot_dimension_numbers<[1], [0], [0], [1], [0, 0, 1, 1], [], []>} : vector<16x256xbf16>, vector<256x384xbf16>, vector<16x384xf32> -> vector<16x384xf32>
    %39 = arith.addf %33, %38 : vector<16x384xf32>
    %c0_25 = arith.constant 0 : index
    %c0_26 = arith.constant 0 : index
    %40 = vector.load %arg5[%c0_25, %c0_26] : memref<1x384xf32, #tpu.memory_space<vmem>>, vector<1x384xf32>
    %41 = vector.broadcast %40 : vector<1x384xf32> to vector<16x384xf32>
    %42 = arith.addf %39, %41 : vector<16x384xf32>
    %cst_27 = arith.constant 0.000000e+00 : f32
    %43 = vector.broadcast %cst_27 : f32 to vector<16x384xf32>
    %44 = arith.maximumf %42, %43 : vector<16x384xf32>
    %45 = arith.truncf %44 : vector<16x384xf32> to vector<16x384xbf16>
    %c0_28 = arith.constant 0 : index
    %c0_29 = arith.constant 0 : index
    %46 = vector.load %arg6[%c0_28, %c0_29] : memref<384x768xbf16, #tpu.memory_space<vmem>>, vector<384x768xbf16>
    %cst_30 = arith.constant dense<0.000000e+00> : vector<16x768xf32>
    %47 = tpu.matmul %45, %46, %cst_30 {dimension_numbers = #tpu.dot_dimension_numbers<[1], [0], [0], [1], [0, 0, 1, 1], [], []>} : vector<16x384xbf16>, vector<384x768xbf16>, vector<16x768xf32> -> vector<16x768xf32>
    %48 = vector.extract_strided_slice %47 {offsets = [0, 0], sizes = [1, 128], strides = [1, 1]} : vector<16x768xf32> to vector<1x128xf32>
    %49 = vector.extract_strided_slice %47 {offsets = [1, 128], sizes = [1, 128], strides = [1, 1]} : vector<16x768xf32> to vector<1x128xf32>
    %50 = arith.addf %48, %49 : vector<1x128xf32>
    %51 = vector.extract_strided_slice %47 {offsets = [2, 256], sizes = [1, 128], strides = [1, 1]} : vector<16x768xf32> to vector<1x128xf32>
    %52 = arith.addf %50, %51 : vector<1x128xf32>
    %53 = vector.extract_strided_slice %47 {offsets = [3, 384], sizes = [1, 128], strides = [1, 1]} : vector<16x768xf32> to vector<1x128xf32>
    %54 = arith.addf %52, %53 : vector<1x128xf32>
    %55 = vector.extract_strided_slice %47 {offsets = [4, 512], sizes = [1, 128], strides = [1, 1]} : vector<16x768xf32> to vector<1x128xf32>
    %56 = arith.addf %54, %55 : vector<1x128xf32>
    %57 = vector.extract_strided_slice %47 {offsets = [5, 640], sizes = [1, 128], strides = [1, 1]} : vector<16x768xf32> to vector<1x128xf32>
    %58 = arith.addf %56, %57 : vector<1x128xf32>
    %59 = vector.extract_strided_slice %47 {offsets = [10, 0], sizes = [1, 128], strides = [1, 1]} : vector<16x768xf32> to vector<1x128xf32>
    %60 = vector.extract_strided_slice %47 {offsets = [11, 128], sizes = [1, 128], strides = [1, 1]} : vector<16x768xf32> to vector<1x128xf32>
    %61 = arith.addf %59, %60 : vector<1x128xf32>
    %62 = vector.extract_strided_slice %47 {offsets = [12, 256], sizes = [1, 128], strides = [1, 1]} : vector<16x768xf32> to vector<1x128xf32>
    %63 = arith.addf %61, %62 : vector<1x128xf32>
    %64 = vector.extract_strided_slice %47 {offsets = [13, 384], sizes = [1, 128], strides = [1, 1]} : vector<16x768xf32> to vector<1x128xf32>
    %65 = arith.addf %63, %64 : vector<1x128xf32>
    %66 = vector.extract_strided_slice %47 {offsets = [14, 512], sizes = [1, 128], strides = [1, 1]} : vector<16x768xf32> to vector<1x128xf32>
    %67 = arith.addf %65, %66 : vector<1x128xf32>
    %68 = vector.extract_strided_slice %47 {offsets = [15, 640], sizes = [1, 128], strides = [1, 1]} : vector<16x768xf32> to vector<1x128xf32>
    %69 = arith.addf %67, %68 : vector<1x128xf32>
    %70 = tpu.concatenate %58, %69 in 0 : vector<1x128xf32>, vector<1x128xf32> -> vector<2x128xf32>
    %c0_31 = arith.constant 0 : index
    %c0_32 = arith.constant 0 : index
    %71 = vector.load %arg7[%c0_31, %c0_32] : memref<1x128xf32, #tpu.memory_space<vmem>>, vector<1x128xf32>
    %72 = vector.broadcast %71 : vector<1x128xf32> to vector<2x128xf32>
    %73 = arith.addf %70, %72 : vector<2x128xf32>
    %cst_33 = arith.constant 0.000000e+00 : f32
    %74 = vector.broadcast %cst_33 : f32 to vector<2x128xf32>
    %75 = arith.maximumf %73, %74 : vector<2x128xf32>
    %76 = arith.truncf %75 : vector<2x128xf32> to vector<2x128xbf16>
    %c0_34 = arith.constant 0 : index
    %c0_35 = arith.constant 0 : index
    %77 = vector.load %arg8[%c0_34, %c0_35] : memref<128x128xbf16, #tpu.memory_space<vmem>>, vector<128x128xbf16>
    %cst_36 = arith.constant dense<0.000000e+00> : vector<2x128xf32>
    %78 = tpu.matmul %76, %77, %cst_36 {dimension_numbers = #tpu.dot_dimension_numbers<[1], [0], [0], [1], [0, 0, 1, 1], [], []>} : vector<2x128xbf16>, vector<128x128xbf16>, vector<2x128xf32> -> vector<2x128xf32>
    %c0_37 = arith.constant 0 : index
    %c0_38 = arith.constant 0 : index
    %79 = vector.load %arg9[%c0_37, %c0_38] : memref<1x128xf32, #tpu.memory_space<vmem>>, vector<1x128xf32>
    %80 = vector.broadcast %79 : vector<1x128xf32> to vector<2x128xf32>
    %81 = arith.addf %78, %80 : vector<2x128xf32>
    %c0_39 = arith.constant 0 : index
    %c0_40 = arith.constant 0 : index
    %82 = vector.load %arg10[%c0_39, %c0_40] : memref<2x128xf32, #tpu.memory_space<vmem>>, vector<2x128xf32>
    tpu.vector_store %arg10[%c0_39, %c0_40], %81 {strides = array<i32>} : memref<2x128xf32, #tpu.memory_space<vmem>>, vector<2x128xf32>,
    return
  }
  func.func @transform_0(%arg0: i32) -> (i32, i32) {
    %c0_i32 = arith.constant 0 : i32
    %c0_i32_0 = arith.constant 0 : i32
    return %arg0, %c0_i32 : i32, i32
  }
  func.func @transform_1(%arg0: i32) -> (i32, i32, i32) {
    %c0_i32 = arith.constant 0 : i32
    %c0_i32_0 = arith.constant 0 : i32
    %c0_i32_1 = arith.constant 0 : i32
    %c0_i32_2 = arith.constant 0 : i32
    return %c0_i32, %c0_i32_0, %c0_i32_1 : i32, i32, i32
  }
  func.func @transform_2(%arg0: i32) -> (i32, i32) {
    %c0_i32 = arith.constant 0 : i32
    %c0_i32_0 = arith.constant 0 : i32
    %c0_i32_1 = arith.constant 0 : i32
    return %c0_i32, %c0_i32_0 : i32, i32
  }
  func.func @transform_3(%arg0: i32) -> (i32, i32, i32) {
    %c0_i32 = arith.constant 0 : i32
    %c0_i32_0 = arith.constant 0 : i32
    %c0_i32_1 = arith.constant 0 : i32
    %c0_i32_2 = arith.constant 0 : i32
    return %c0_i32, %c0_i32_0, %c0_i32_1 : i32, i32, i32
  }
  func.func @transform_4(%arg0: i32) -> (i32, i32) {
    %c0_i32 = arith.constant 0 : i32
    %c0_i32_0 = arith.constant 0 : i32
    %c0_i32_1 = arith.constant 0 : i32
    return %c0_i32, %c0_i32_0 : i32, i32
  }
  func.func @transform_5(%arg0: i32) -> (i32, i32) {
    %c0_i32 = arith.constant 0 : i32
    %c0_i32_0 = arith.constant 0 : i32
    %c0_i32_1 = arith.constant 0 : i32
    return %c0_i32, %c0_i32_0 : i32, i32
  }
  func.func @transform_6(%arg0: i32) -> (i32, i32) {
    %c0_i32 = arith.constant 0 : i32
    %c0_i32_0 = arith.constant 0 : i32
    %c0_i32_1 = arith.constant 0 : i32
    return %c0_i32, %c0_i32_0 : i32, i32
  }
  func.func @transform_7(%arg0: i32) -> (i32, i32) {
    %c0_i32 = arith.constant 0 : i32
    %c0_i32_0 = arith.constant 0 : i32
    %c0_i32_1 = arith.constant 0 : i32
    return %c0_i32, %c0_i32_0 : i32, i32
  }
  func.func @transform_8(%arg0: i32) -> (i32, i32) {
    %c0_i32 = arith.constant 0 : i32
    %c0_i32_0 = arith.constant 0 : i32
    %c0_i32_1 = arith.constant 0 : i32
    return %c0_i32, %c0_i32_0 : i32, i32
  }
  func.func @transform_9(%arg0: i32) -> (i32, i32) {
    %c0_i32 = arith.constant 0 : i32
    %c0_i32_0 = arith.constant 0 : i32
    return %arg0, %c0_i32 : i32, i32
  }
}

</mosaic_0001>

<bundles_post_ra>
// kernel: cnn_forward.1
= control target key start
LH: loop header
LB: loop body
LE: loop exit
PB: predicated region body
PF: predicated region fallthrough
CT: control target
= control target key end

     0   :  { %14 = vsyncpa [#allocation3], 0  ;;  %s4065_s0 = inlined_call_operand.vmem [shape: f32[20,10], index: 0, kind: input, shape index: {}]   ;;  %s4066_s1 = inlined_call_operand.vmem [shape: bf16[3,10,256], index: 1, kind: input, shape index: {}]   ;;  %s4067_s2 = inlined_call_operand.vmem [shape: f32[1,256], index: 2, kind: input, shape index: {}]   ;;  %s4068_s3 = inlined_call_operand.hbm [shape: bf16[3,256,384], index: 3, kind: input, shape index: {}]   ;;  %s4069_s4 = inlined_call_operand.vmem [shape: f32[1,384], index: 4, kind: input, shape index: {}]   ;;  %s4070_s5 = inlined_call_operand.hbm [shape: bf16[384,768], index: 5, kind: input, shape index: {}]   ;;  %s4071_s6 = inlined_call_operand.vmem [shape: f32[1,128], index: 6, kind: input, shape index: {}]   ;;  %s4072_s7 = inlined_call_operand.vmem [shape: bf16[128,128], index: 7, kind: input, shape index: {}]   ;;  %s4073_s8 = inlined_call_operand.vmem [shape: f32[1,128], index: 8, kind: input, shape index: {}]   ;;  %s4074_s9 = inlined_call_operand.hbm [shape: f32[2,128], index: 9, kind: output, shape index: {}]  }
   0x1   :  { %15 = vsyncpa [#allocation6], 0 }
   0x2   :  { %16 = vsyncpa [#allocation4], 0  ;;  %s3852_s30 = smov [#allocation2]  }
   0x3   :  { %s28_s10 = sshll.u32 %s3852_s30, 4  ;;  %s29_s10 = int_to_ptr.vmem [resolvable:$true] %s28_s10 }
   0x4   :  { %s3794_s11 = scalar_lea.vmem %s29_s10, 18432  ;;  %p3799_p1 = scmp.lt.s32.totalorder %s29_s10, %s29_s10 }
   0x5   :  { %p3795_p0 = scmp.ne.s32.totalorder %s29_s10, %s3794_s11  ;;  %p3800_p2 = scmp.lt.s32.totalorder %s3794_s11, %s3794_s11 }
   0x7   :  { %p3801_p3 = por %p3800_p2, %p3799_p1 }
   0x9   :  { %p3802_p4 = pnand %p3801_p3, %p3795_p0 }
   0xb   :  { %3805 = shalt.err (!%p3802_p4)
}
   0xc   :  { %s3853_s12 = smov 192   ;;  %s3854_s13 = smov 12  }
   0xd   :  { %34 = dma.hbm_to_vmem [thread:$0]  %s4068_s3, 18432, %s29_s10, [#allocation3], %s3853_s12, %s3853_s12, %s3854_s13  }
   0xe   :  { %s3855_s16 = smov [#allocation5]  }
   0xf   :  { %s42_s17 = sshll.u32 %s3855_s16, 4  ;;  %s43_s17 = int_to_ptr.vmem [resolvable:$true] %s42_s17 }
  0x10   :  { %s3814_s18 = scalar_lea.vmem %s43_s17, 18432  ;;  %p3819_p6 = scmp.lt.s32.totalorder %s43_s17, %s43_s17 }
  0x11   :  { %p3815_p5 = scmp.ne.s32.totalorder %s43_s17, %s3814_s18  ;;  %p3820_p7 = scmp.lt.s32.totalorder %s3814_s18, %s3814_s18 }
  0x13   :  { %p3821_p8 = por %p3820_p7, %p3819_p6 }
  0x15   :  { %p3822_p9 = pnand %p3821_p8, %p3815_p5 }
  0x17   :  { %3825 = shalt.err (!%p3822_p9)
}
  0x18   :  { %s3856_s19 = smov 384   ;;  %s3857_s20 = smov 24  }
  0x19   :  { %48 = dma.hbm_to_vmem [thread:$0]  %s4070_s5, 18432, %s43_s17, [#allocation6], %s3856_s19, %s3856_s19, %s3857_s20  }
  0x1a   :  { %3846 = dma.done.wait [#allocation3], 18432  }
  0x1b   :  { %3847 = vsyncadd [#allocation3], 4294948864 }
  0x1c   :  { %3848 = dma.done.wait [#allocation6], 18432  }
  0x1d   :  { %3849 = vsyncadd [#allocation6], 4294948864  ;;  %v3858_v0 = vmov 0   ;;  %vm103_vm0 = vcmask 1044480   ;;  %v62_v6 = vld [vmem:[%s4065_s0] sm:$0xff]  ;;  %v63_v9 = vld [vmem:[%s4065_s0 + $0x8] sm:$0xff] }
  0x1e   :  { %142 = vmatprep.mubr.bf16.mxu0 %v3858_v0  ;;  %211 = vmatprep.mubr.bf16.mxu1 %v3858_v0  ;;  %v3361_v1 = vld [vmem:[%s4066_s1 + $0x14] ss:$8 sps:$4 sm:$0x1f]   ;;  %v3363_v2 = vld [vmem:[%s4066_s1 + $0x10] ss:$8 sps:$4 sm:$0x1f]   ;;  %v65_v11 = vpack.c.bf16 %v63_v9, %v62_v6 }
  0x1f   :  { %2943 = vmatprep.subr.msk.bf16.mxu0 %vm103_vm0, %v3361_v1  ;;  %v3364_v3 = vld [vmem:[%s4066_s1 + $0x4] ss:$8 sps:$4 sm:$0x1f]   ;;  %v3366_v4 = vld [vmem:[%s4066_s1] ss:$8 sps:$4 sm:$0x1f]  }
  0x20   :  { %v105_v5 = vsel %vm103_vm0, %v3363_v2, 0  ;;  %2948 = vmatprep.subr.msk.bf16.mxu1 %vm103_vm0, %v3364_v3  ;;  %v174_v7 = vsel %vm103_vm0, %v3366_v4, 0  ;;  %v3367_v8 = vld [vmem:[%s4066_s1 + $0x24] ss:$8 sps:$4 sm:$0x1f]   ;;  %vm96_vm1 = vcmask 80896  }
  0x21   :  { %125 = vmatpush1.bf16.msra.mxu0 %v105_v5  ;;  %194 = vmatpush1.bf16.msra.mxu1 %v174_v7  ;;  %v64_v10 = vld [vmem:[%s4065_s0 + $0x10] sm:$0xf]  ;;  %v3370_v13 = vld [vmem:[#allocation2 + $0x228] ss:$12 sps:$4 sm:$0xff]   ;;  %v3372_v14 = vld [vmem:[#allocation2 + $0x22c] ss:$12 sps:$4 sm:$0xff]  }
  0x22   :  { %2955 = vmatprep.subr.msk.bf16.mxu0 %vm103_vm0, %v3367_v8  ;;  %v66_v12 = vpack.c.bf16 %v64_v10, %v64_v10  ;;  %v74_v15 = vshrl.u32 %v65_v11, 16  ;;  %v76_v16 = vshll.u32 %v65_v11, 16  ;;  %v3369_v18 = vld [vmem:[%s4066_s1 + $0x20] ss:$8 sps:$4 sm:$0x1f]   ;;  %755 = vmatprep.subr.bf16.mxu1 %v3372_v14  ;;  %vm235_vm3 = vcmask 1046528  }
  0x23   :  { %v3373_v20 = vld [vmem:[#allocation2 + $0x210] ss:$12 sps:$4 sm:$0xff]   ;;  %v3375_v21 = vld [vmem:[#allocation2 + $0x214] ss:$12 sps:$4 sm:$0xff]   ;;  %vm72_vm2 = vsmask.f32 7424 }
  0x24   :  { %v81_v17 = vshll.u32 %v66_v12, 16  ;;  %2949 = vmatmul.mubr.msk.bf16.vlgmr.msra.gmra.mxu1 %vm96_vm1, %v65_v11  ;;  %v78_v19 = vrot.slane %v76_v16, 1  ;;  %v3378_v23 = vld [vmem:[#allocation2 + $0x1fc] ss:$12 sps:$4 sm:$0xff]   ;;  %v254_v25 = vsel %vm103_vm0, %v3369_v18, 0  ;;  %v85_v29 = vshrl.u32 %v66_v12, 16 }
  0x25   :  { %221 = vmatprep.mubr.bf16.mxu1 %v3858_v0  ;;  %756 = vmatpush1.bf16.msra.mxu1 %v3370_v13  ;;  %v3376_v27 = vld [vmem:[#allocation2 + $0x1f8] ss:$12 sps:$4 sm:$0xff]   ;;  %v3379_v30 = vld [vmem:[#allocation2 + $0x1e0] ss:$12 sps:$4 sm:$0xff]   ;;  %v3382_v33 = vld [vmem:[#allocation2 + $0x1c8] ss:$12 sps:$4 sm:$0xff]  }
  0x26   :  { %v83_v22 = vrot.slane %v81_v17, 1  ;;  %v79_v24 = vor.u32 %v78_v19, %v74_v15  ;;  %757 = vmatprep.subr.bf16.mxu1 %v3375_v21  ;;  %v3381_v28 = vld [vmem:[#allocation2 + $0x1e4] ss:$12 sps:$4 sm:$0xff]   ;;  %v3384_v31 = vld [vmem:[#allocation2 + $0x1cc] ss:$12 sps:$4 sm:$0xff]   ;;  %v236_v35 = vrot.slane %v65_v11, 1 }
  0x27   :  { %v3387_v34 = vld [vmem:[#allocation2 + $0x1b4] ss:$12 sps:$4 sm:$0xff]   ;;  %v237_v36 = vrot.slane %v66_v12, 1  ;;  %v3385_v37 = vld [vmem:[#allocation2 + $0x1b0] ss:$12 sps:$4 sm:$0xff]   ;;  %vm3860_vm4 = vmmov 0  }
  0x28   :  { %v84_v26 = vsel %vm72_vm2, %v79_v24, %v83_v22  ;;  %v87_v32 = vor.u32 %v85_v29, %v83_v22  ;;  %v3390_v39 = vld [vmem:[#allocation2 + $0x19c] ss:$12 sps:$4 sm:$0xff]   ;;  %v3388_v40 = vld [vmem:[#allocation2 + $0x198] ss:$12 sps:$4 sm:$0xff]   ;;  %v3391_v42 = vld [vmem:[#allocation2 + $0x180] ss:$12 sps:$4 sm:$0xff]  }
  0x29   :  { %758 = vmatpush1.bf16.msra.mxu1 %v3373_v20  ;;  %2944 = vmatmul.mubr.msk.bf16.vlgmr.msra.gmra.mxu0 %vm96_vm1, %v84_v26  ;;  %v238_v38 = vsel %vm235_vm3, %v236_v35, %v237_v36  ;;  %v3393_v41 = vld [vmem:[#allocation2 + $0x184] ss:$12 sps:$4 sm:$0xff]   ;;  %v3396_v43 = vld [vmem:[#allocation2 + $0x2ec] ss:$12 sps:$4 sm:$0xff]   ;;  %v3394_v45 = vld [vmem:[#allocation2 + $0x2e8] ss:$12 sps:$4 sm:$0xff]  }
  0x2a   :  { %759 = vmatprep.subr.bf16.mxu1 %v3378_v23  ;;  %274 = vmatpush1.bf16.msra.mxu0 %v254_v25  ;;  %v3397_v44 = vld [vmem:[#allocation2 + $0x2f0] ss:$12 sps:$4 sm:$0xff]   ;;  %v3401_v47 = vld [vmem:[#allocation2 + $0x2d4] ss:$12 sps:$4 sm:$0xff]   ;;  %v3402_v48 = vld [vmem:[#allocation2 + $0x2d8] ss:$12 sps:$4 sm:$0xff]   ;;  %v318_v23 = vlaneseq }
  0x2b   :  { %152 = vmatprep.mubr.bf16.mxu0 %v3858_v0  ;;  %v3398_v46 = vld [vmem:[#allocation2 + $0x230] ss:$12 sps:$4 sm:$0xff]   ;;  %3256 = vmatprep.subr.bf16.mxu0 %v3397_v44  ;;  %v3403_v50 = vld [vmem:[#allocation2 + $0x218] ss:$12 sps:$4 sm:$0xff]   ;;  %v3407_v52 = vld [vmem:[#allocation2 + $0x2c0] ss:$12 sps:$4 sm:$0xff]  }
  0x2c   :  { %2950 = vmatmul.mubr.msk.bf16.gmra.mxu1 %vm96_vm1, %v66_v12  ;;  %v3399_v49 = vld [vmem:[#allocation2 + $0x2d0] ss:$12 sps:$4 sm:$0xff]   ;;  %v3404_v53 = vld [vmem:[#allocation2 + $0x2b8] ss:$12 sps:$4 sm:$0xff]   ;;  %v3408_v54 = vld [vmem:[#allocation2 + $0x200] ss:$12 sps:$4 sm:$0xff]  }
  0x2d   :  { %760 = vmatpush1.bf16.msra.mxu1 %v3376_v27  ;;  %v3406_v51 = vld [vmem:[#allocation2 + $0x2bc] ss:$12 sps:$4 sm:$0xff]   ;;  %v3411_v55 = vld [vmem:[#allocation2 + $0x2a4] ss:$12 sps:$4 sm:$0xff]   ;;  %v3409_v57 = vld [vmem:[#allocation2 + $0x2a0] ss:$12 sps:$4 sm:$0xff]  }
  0x2e   :  { %761 = vmatprep.subr.bf16.mxu1 %v3381_v28  ;;  %v3412_v56 = vld [vmem:[#allocation2 + $0x2a8] ss:$12 sps:$4 sm:$0xff]   ;;  %v3416_v59 = vld [vmem:[#allocation2 + $0x28c] ss:$12 sps:$4 sm:$0xff]   ;;  %v3417_v60 = vld [vmem:[#allocation2 + $0x290] ss:$12 sps:$4 sm:$0xff]  }
  0x2f   :  { %v3413_v58 = vld [vmem:[#allocation2 + $0x1e8] ss:$12 sps:$4 sm:$0xff]   ;;  %v3418_v62 = vld [vmem:[#allocation2 + $0x1d0] ss:$12 sps:$4 sm:$0xff]   ;;  %v3422_v1 = vld [vmem:[#allocation2 + $0x278] ss:$12 sps:$4 sm:$0xff]  }
  0x30   :  { %v3414_v61 = vld [vmem:[#allocation2 + $0x288] ss:$12 sps:$4 sm:$0xff]   ;;  %v3419_v2 = vld [vmem:[#allocation2 + $0x270] ss:$12 sps:$4 sm:$0xff]   ;;  %v3423_v3 = vld [vmem:[#allocation2 + $0x1b8] ss:$12 sps:$4 sm:$0xff]  }
  0x31   :  { %762 = vmatpush1.bf16.msra.mxu1 %v3379_v30  ;;  %2945 = vmatmul.mubr.msk.bf16.gmra.mxu0 %vm96_vm1, %v87_v32  ;;  %v3421_v63 = vld [vmem:[#allocation2 + $0x274] ss:$12 sps:$4 sm:$0xff]   ;;  %v3426_v4 = vld [vmem:[#allocation2 + $0x25c] ss:$12 sps:$4 sm:$0xff]   ;;  %v3424_v6 = vld [vmem:[#allocation2 + $0x258] ss:$12 sps:$4 sm:$0xff]  }
  0x32   :  { %763 = vmatprep.subr.bf16.mxu1 %v3384_v31  ;;  %291 = vmatprep.mubr.bf16.mxu0 %v3858_v0  ;;  %v3427_v5 = vld [vmem:[#allocation2 + $0x260] ss:$12 sps:$4 sm:$0xff]   ;;  %v3431_v8 = vld [vmem:[#allocation2 + $0x244] ss:$12 sps:$4 sm:$0xff]   ;;  %v3432_v9 = vld [vmem:[#allocation2 + $0x248] ss:$12 sps:$4 sm:$0xff]  }
  0x33   :  { %v3428_v7 = vld [vmem:[#allocation2 + $0x1a0] ss:$12 sps:$4 sm:$0xff]   ;;  %v3433_v11 = vld [vmem:[#allocation2 + $0x188] ss:$12 sps:$4 sm:$0xff]   ;;  %v3437_v13 = vld [vmem:[#allocation2 + $0x170] ss:$12 sps:$4 sm:$0xff]  }
  0x34   :  { %v3429_v10 = vld [vmem:[#allocation2 + $0x240] ss:$12 sps:$4 sm:$0xff]   ;;  %v3965_v28 = vshrl.u32 %v318_v23, 7  ;;  %v3438_v23 = vld [vmem:[#allocation2 + $0xb0] ss:$12 sps:$4 sm:$0xff]   ;;  %vm2799_vm5 = vcmask 1040384  }
  0x35   :  { %764 = vmatpush1.bf16.msra.mxu1 %v3382_v33  ;;  %v3436_v12 = vld [vmem:[#allocation2 + $0xac] ss:$12 sps:$4 sm:$0xff]   ;;  %v316_v33 = vld [vmem:[%s4067_s2] sm:$0x3]  ;;  %s3861_s14 = smov [#allocation7]  }
  0x36   :  { %765 = vmatprep.subr.bf16.mxu1 %v3387_v34  ;;  %v320_v31 = vsub.s32 0, %v3965_v28  ;;  %v324_v34 = vsub.s32 1, %v3965_v28  ;;  %s2929_s15 = sshll.u32 %s3861_s14, 4  ;;  %s2930_s15 = int_to_ptr.vmem [resolvable:$true] %s2929_s15 }
  0x37   :  { %s3826_s16 = scalar_lea.vmem %s2930_s15, 32  ;;  %p3831_p11 = scmp.lt.s32.totalorder %s2930_s15, %s2930_s15 }
  0x38   :  { %p3827_p10 = scmp.ne.s32.totalorder %s2930_s15, %s3826_s16  ;;  %p3832_p12 = scmp.lt.s32.totalorder %s3826_s16, %s3826_s16 }
  0x39   :  { %766 = vmatpush1.bf16.msra.mxu1 %v3385_v37  ;;  %2956 = vmatmul.mubr.msk.bf16.vlgmr.msra.gmra.mxu0 %vm96_vm1, %v238_v38 }
  0x3a   :  { %301 = vmatprep.mubr.bf16.mxu0 %v3858_v0  ;;  %767 = vmatprep.subr.bf16.mxu1 %v3390_v39  ;;  %v321_v39 = vrot.slane %v316_v33, %v320_v31  ;;  %p3833_p13 = por %p3832_p12, %p3831_p11 }
  0x3b   :  { %3257 = vmatpush3.bf16.msra.mxu0 %v3398_v46 }
  0x3c   :  { %3258 = vmatprep.subr.bf16.mxu0 %v3402_v48  ;;  %p3834_p0 = pnand %p3833_p13, %p3827_p10 }
  0x3d   :  { %768 = vmatpush1.bf16.msra.mxu1 %v3388_v40 }
  0x3e   :  { %769 = vmatprep.subr.bf16.mxu1 %v3393_v41  ;;  %v325_v41 = vrot.slane %v316_v33, %v324_v34  ;;  %v3447_v33 = vld [vmem:[#allocation2 + $0x140] ss:$12 sps:$4 sm:$0xff]  }
  0x3f   :  { %3259 = vmatpush3.bf16.msra.mxu0 %v3403_v50 }
  0x40   :  { %3260 = vmatprep.subr.bf16.mxu0 %v3407_v52 }
  0x41   :  { %2957 = vmatmul.mubr.msk.bf16.gmra.mxu0 %vm96_vm1, %v237_v36  ;;  %770 = vmatpush1.bf16.msra.mxu1 %v3391_v42 }
  0x42   :  { %771 = vmatprep.subr.bf16.mxu1 %v3396_v43 }
  0x43   :  { %3261 = vmatpush3.bf16.msra.mxu0 %v3408_v54 }
  0x44   :  { %3262 = vmatprep.subr.bf16.mxu0 %v3412_v56 }
  0x45   :  { %772 = vmatpush2.bf16.msra.mxu1 %v3394_v45 }
  0x46   :  { %773 = vmatprep.subr.bf16.mxu1 %v3401_v47 }
  0x47   :  { %3263 = vmatpush3.bf16.msra.mxu0 %v3413_v58 }
  0x48   :  { %3264 = vmatprep.subr.bf16.mxu0 %v3417_v60 }
  0x49   :  { %774 = vmatpush2.bf16.msra.mxu1 %v3399_v49 }
  0x4a   :  { %775 = vmatprep.subr.bf16.mxu1 %v3406_v51 }
  0x4b   :  { %3265 = vmatpush3.bf16.msra.mxu0 %v3418_v62 }
  0x4c   :  { %3266 = vmatprep.subr.bf16.mxu0 %v3422_v1 }
  0x4d   :  { %776 = vmatpush2.bf16.msra.mxu1 %v3404_v53 }
  0x4e   :  { %777 = vmatprep.subr.bf16.mxu1 %v3411_v55 }
  0x4f   :  { %3267 = vmatpush3.bf16.msra.mxu0 %v3423_v3 }
  0x50   :  { %3268 = vmatprep.subr.bf16.mxu0 %v3427_v5 }
  0x51   :  { %778 = vmatpush2.bf16.msra.mxu1 %v3409_v57 }
  0x52   :  { %779 = vmatprep.subr.bf16.mxu1 %v3416_v59 }
  0x53   :  { %3269 = vmatpush3.bf16.msra.mxu0 %v3428_v7 }
  0x54   :  { %3270 = vmatprep.subr.bf16.mxu0 %v3432_v9 }
  0x55   :  { %780 = vmatpush2.bf16.msra.mxu1 %v3414_v61 }
  0x56   :  { %781 = vmatprep.subr.bf16.mxu1 %v3421_v63 }
  0x57   :  { %3271 = vmatpush3.bf16.msra.mxu0 %v3433_v11 }
  0x58   :  { %1095 = vmatprep.subr.bf16.mxu0 %v3436_v12 }
  0x59   :  { %782 = vmatpush2.bf16.msra.mxu1 %v3419_v2 }
  0x5a   :  { %783 = vmatprep.subr.bf16.mxu1 %v3426_v4 }
  0x5d   :  { %784 = vmatpush2.bf16.msra.mxu1 %v3424_v6 }
  0x5e   :  { %785 = vmatprep.subr.bf16.mxu1 %v3431_v8 }
  0x61   :  { %786 = vmatpush2.bf16.msra.mxu1 %v3429_v10 }
  0x62   :  { %3278 = vmatprep.subr.bf16.mxu1 %v3437_v13 }
  0xe4   :  { %v213_v14 = vpop.f32.mrf.mxu1 }
  0xe6   :  { %v215_v15 = vpop.f32.mrf.mxu1 }
  0xe8   :  { %v217_v16 = vpop.f32.mrf.mxu1 }
  0xe9   :  { %v144_v17 = vpop.f32.mrf.mxu0 }
  0xea   :  { %v219_v18 = vpop.f32.mrf.mxu1  ;;  %v214_v35 = vadd.f32 %v213_v14, %v144_v17 }
  0xeb   :  { %v146_v19 = vpop.f32.mrf.mxu0 }
  0xec   :  { %v223_v20 = vpop.f32.mrf.mxu1  ;;  %v216_v37 = vadd.f32 %v215_v15, %v146_v19 }
  0xed   :  { %v148_v21 = vpop.f32.mrf.mxu0 }
  0xee   :  { %v225_v22 = vpop.f32.mrf.mxu1  ;;  %v218_v42 = vadd.f32 %v217_v16, %v148_v21  ;;  %v3434_v21 = vld [vmem:[#allocation2 + $0xa8] ss:$12 sps:$4 sm:$0xff]  }
  0xef   :  { %v150_v24 = vpop.f32.mrf.mxu0 }
  0xf0   :  { %v227_v25 = vpop.f32.mrf.mxu1  ;;  %v220_v45 = vadd.f32 %v219_v18, %v150_v24 }
  0xf1   :  { %v154_v26 = vpop.f32.mrf.mxu0 }
  0xf2   :  { %v228_v27 = vpop.f32.mrf.mxu1  ;;  %v224_v50 = vadd.f32 %v223_v20, %v154_v26  ;;  %v3441_v26 = vld [vmem:[#allocation2 + $0x94] ss:$12 sps:$4 sm:$0xff]  }
  0xf3   :  { %v156_v29 = vpop.f32.mrf.mxu0  ;;  %v3442_v27 = vld [vmem:[#allocation2 + $0x158] ss:$12 sps:$4 sm:$0xff]  }
  0xf4   :  { %v226_v53 = vadd.f32 %v225_v22, %v156_v29  ;;  %v3439_v29 = vld [vmem:[#allocation2 + $0x90] ss:$12 sps:$4 sm:$0xff]  }
  0xf5   :  { %v158_v30 = vpop.f32.mrf.mxu0 }
  0xf6   :  { %v3443_v30 = vld [vmem:[#allocation2 + $0x98] ss:$12 sps:$4 sm:$0xff]  }
  0xf7   :  { %v159_v32 = vpop.f32.mrf.mxu0 }
  0xf8   :  { %v3446_v32 = vld [vmem:[#allocation2 + $0x7c] ss:$12 sps:$4 sm:$0xff]  }
  0xf9   :  { %v293_v36 = vpop.f32.mrf.mxu0 }
  0xfa   :  { %v310_v38 = vadd.f32 %v293_v36, %v214_v35  ;;  %v3444_v35 = vld [vmem:[#allocation2 + $0x78] ss:$12 sps:$4 sm:$0xff]   ;;  %v3448_v36 = vld [vmem:[#allocation2 + $0x80] ss:$12 sps:$4 sm:$0xff]  }
  0xfb   :  { %v295_v40 = vpop.f32.mrf.mxu0 }
  0xfc   :  { %v311_v43 = vadd.f32 %v295_v40, %v216_v37  ;;  %v328_v46 = vadd.f32 %v321_v39, %v310_v38  ;;  %v3451_v37 = vld [vmem:[#allocation2 + $0x64] ss:$12 sps:$4 sm:$0xff]   ;;  %v3452_v38 = vld [vmem:[#allocation2 + $0x128] ss:$12 sps:$4 sm:$0xff]  }
  0xfd   :  { %v297_v44 = vpop.f32.mrf.mxu0  ;;  %v3453_v40 = vld [vmem:[#allocation2 + $0x68] ss:$12 sps:$4 sm:$0xff]  }
  0xfe   :  { %v312_v47 = vadd.f32 %v297_v44, %v218_v42  ;;  %v329_v48 = vadd.f32 %v325_v41, %v311_v43  ;;  %v334_v55 = vmax.f32 %v328_v46, 0.0  ;;  %v3457_v42 = vld [vmem:[#allocation2 + $0x110] ss:$12 sps:$4 sm:$0xff]   ;;  %v3454_v43 = vld [vmem:[#allocation2 + $0x48] ss:$12 sps:$4 sm:$0xff]  }
  0xff   :  { %v299_v49 = vpop.f32.mrf.mxu0  ;;  %v3458_v44 = vld [vmem:[#allocation2 + $0x50] ss:$12 sps:$4 sm:$0xff]   ;;  %v3462_v46 = vld [vmem:[#allocation2 + $0xf8] ss:$12 sps:$4 sm:$0xff]  }
 0x100   :  { %v330_v51 = vadd.f32 %v321_v39, %v312_v47  ;;  %v313_v52 = vadd.f32 %v299_v49, %v220_v45  ;;  %v335_v59 = vmax.f32 %v329_v48, 0.0  ;;  %v3461_v45 = vld [vmem:[#allocation2 + $0x34] ss:$12 sps:$4 sm:$0xff]   ;;  %v3459_v47 = vld [vmem:[#allocation2 + $0x30] ss:$12 sps:$4 sm:$0xff]  }
 0x101   :  { %v303_v54 = vpop.f32.mrf.mxu0  ;;  %v3463_v48 = vld [vmem:[#allocation2 + $0x38] ss:$12 sps:$4 sm:$0xff]   ;;  %v3466_v49 = vld [vmem:[#allocation2 + $0x1c] ss:$12 sps:$4 sm:$0xff]  }
 0x102   :  { %v336_v56 = vmax.f32 %v330_v51, 0.0  ;;  %v331_v57 = vadd.f32 %v325_v41, %v313_v52  ;;  %v314_v58 = vadd.f32 %v303_v54, %v224_v50  ;;  %v3467_v50 = vld [vmem:[#allocation2 + $0xe0] ss:$12 sps:$4 sm:$0xff]   ;;  %v3464_v51 = vld [vmem:[#allocation2 + $0x18] ss:$12 sps:$4 sm:$0xff]  }
 0x103   :  { %v305_v60 = vpop.f32.mrf.mxu0  ;;  %v3468_v52 = vld [vmem:[#allocation2 + $0x20] ss:$12 sps:$4 sm:$0xff]   ;;  %v3472_v54 = vld [vmem:[#allocation2 + $0xc8] ss:$12 sps:$4 sm:$0xff]  }
 0x104   :  { %v3976_v61 = vpack.c.bf16 %v336_v56, %v334_v55  ;;  %v337_v62 = vmax.f32 %v331_v57, 0.0  ;;  %v332_v63 = vadd.f32 %v321_v39, %v314_v58  ;;  %v315_v1 = vadd.f32 %v305_v60, %v226_v53  ;;  %v3449_v39 = vld [vmem:[#allocation2 + $0x60] ss:$12 sps:$4 sm:$0xff]   ;;  %v3471_v53 = vld [vmem:[#allocation2 + $0x4] ss:$12 sps:$4 sm:$0xff]  }
 0x105   :  { %v307_v2 = vpop.f32.mrf.mxu0  ;;  %v3469_v55 = vld [vmem:[#allocation2] ss:$12 sps:$4 sm:$0xff]   ;;  %v3473_v56 = vld [vmem:[#allocation2 + $0x8] ss:$12 sps:$4 sm:$0xff]  }
 0x106   :  { %v3978_v3 = vpack.c.bf16 %v337_v62, %v335_v59  ;;  %v338_v4 = vmax.f32 %v332_v63, 0.0  ;;  %v333_v5 = vadd.f32 %v325_v41, %v315_v1  ;;  %v476_v7 = vshll.u32 %v3976_v61, 16  ;;  %v3456_v41 = vld [vmem:[#allocation2 + $0x4c] ss:$12 sps:$4 sm:$0xff]   ;;  %v3474_v60 = vld [vmem:[#allocation2 + $0x168] ss:$12 sps:$4 sm:$0xff]  }
 0x107   :  { %v308_v6 = vpop.f32.mrf.mxu0  ;;  %v474_v18 = vshrl.u32 %v3976_v61, 16  ;;  %v3476_v57 = vld [vmem:[#allocation2 + $0x16c] ss:$12 sps:$4 sm:$0xff]   ;;  %v3477_v62 = vld [vmem:[#allocation2 + $0x3a8] ss:$12 sps:$4 sm:$0xff]  }
 0x108   :  { %v3981_v8 = vpack.c.bf16 %v338_v4, %v338_v4  ;;  %v339_v9 = vmax.f32 %v333_v5, 0.0  ;;  %v488_v10 = vshll.u32 %v3978_v3, 16  ;;  %v478_v14 = vrot.slane %v476_v7, 1  ;;  %v3479_v58 = vld [vmem:[#allocation2 + $0x3ac] ss:$12 sps:$4 sm:$0xff]  }
 0x109   :  { %v486_v16 = vshrl.u32 %v3978_v3, 16  ;;  %v3482_v63 = vld [vmem:[#allocation2 + $0x154] ss:$12 sps:$4 sm:$0xff]   ;;  %v1251_v1 = vrot.slane %v3978_v3, 1  ;;  %v3480_v5 = vld [vmem:[#allocation2 + $0x150] ss:$12 sps:$4 sm:$0xff]  }
 0x10a   :  { %v481_v11 = vshll.u32 %v3981_v8, 16  ;;  %v3985_v12 = vpack.c.bf16 %v339_v9, %v339_v9  ;;  %v490_v13 = vrot.slane %v488_v10, 1  ;;  %v479_v22 = vor.u32 %v478_v14, %v474_v18  ;;  %v3485_v2 = vld [vmem:[#allocation2 + $0x394] ss:$12 sps:$4 sm:$0xff]   ;;  %v3483_v6 = vld [vmem:[#allocation2 + $0x390] ss:$12 sps:$4 sm:$0xff]  }
 0x10b   :  { %v3488_v7 = vld [vmem:[#allocation2 + $0x13c] ss:$12 sps:$4 sm:$0xff]   ;;  %v3486_v10 = vld [vmem:[#allocation2 + $0x138] ss:$12 sps:$4 sm:$0xff]   ;;  %v3495_v14 = vld [vmem:[#allocation2 + $0x360] ss:$12 sps:$4 sm:$0xff]  }
 0x10c   :  { %v493_v15 = vshll.u32 %v3985_v12, 16  ;;  %v483_v17 = vrot.slane %v481_v11, 1  ;;  %v491_v20 = vor.u32 %v490_v13, %v486_v16  ;;  %v1252_v59 = vrot.slane %v3985_v12, 1  ;;  %v3491_v9 = vld [vmem:[#allocation2 + $0x37c] ss:$12 sps:$4 sm:$0xff]  }
 0x10d   :  { %v3494_v11 = vld [vmem:[#allocation2 + $0x124] ss:$12 sps:$4 sm:$0xff]   ;;  %v3492_v13 = vld [vmem:[#allocation2 + $0x120] ss:$12 sps:$4 sm:$0xff]   ;;  %v3501_v18 = vld [vmem:[#allocation2 + $0x348] ss:$12 sps:$4 sm:$0xff]  }
 0x10e   :  { %v495_v19 = vrot.slane %v493_v15, 1  ;;  %v484_v25 = vsel %vm72_vm2, %v479_v22, %v483_v17  ;;  %v3998_v4 = vsel %vm235_vm3, %v1251_v1, %v1252_v59  ;;  %v3497_v12 = vld [vmem:[#allocation2 + $0x364] ss:$12 sps:$4 sm:$0xff]   ;;  %v3500_v15 = vld [vmem:[#allocation2 + $0x10c] ss:$12 sps:$4 sm:$0xff]  }
 0x10f   :  { %v3503_v16 = vld [vmem:[#allocation2 + $0x34c] ss:$12 sps:$4 sm:$0xff]   ;;  %v3498_v17 = vld [vmem:[#allocation2 + $0x108] ss:$12 sps:$4 sm:$0xff]   ;;  %v3507_v22 = vld [vmem:[#allocation2 + $0x330] ss:$12 sps:$4 sm:$0xff]  }
 0x110   :  { %v496_v24 = vsel %vm72_vm2, %v491_v20, %v495_v19  ;;  %v3506_v19 = vld [vmem:[#allocation2 + $0xf4] ss:$12 sps:$4 sm:$0xff]  }
 0x111   :  { %787 = vmatprep.mubr.bf16.mxu1 %v496_v24  ;;  %830 = vmatprep.mubr.bf16.mxu0 %v496_v24  ;;  %v3509_v20 = vld [vmem:[#allocation2 + $0x334] ss:$12 sps:$4 sm:$0xff]   ;;  %v3515_v24 = vld [vmem:[#allocation2 + $0x31c] ss:$12 sps:$4 sm:$0xff]  }
 0x112   :  { %788 = vmatmul.mubr.bf16.vlgmr.msra.gmra.mxu1 %v484_v25  ;;  %831 = vmatmul.mubr.bf16.vlgmr.msra.gmra.mxu0 %v484_v25  ;;  %v3510_v25 = vld [vmem:[#allocation2 + $0xd8] ss:$12 sps:$4 sm:$0xff]   ;;  %v3555_v59 = vld [vmem:[#allocation2 + $0x3e0] ss:$12 sps:$4 sm:$0xff]   ;;  %v3560_v1 = vld [vmem:[#allocation2 + $0x3c8] ss:$12 sps:$4 sm:$0xff]  }
 0x113   :  { %1096 = vmatpush1.bf16.msra.mxu0 %v3434_v21  ;;  %3279 = vmatpush3.bf16.msra.mxu1 %v3438_v23  ;;  %v3504_v21 = vld [vmem:[#allocation2 + $0xf0] ss:$12 sps:$4 sm:$0xff]  }
 0x114   :  { %1127 = vmatprep.mubr.bf16.mxu0 %v3978_v3  ;;  %1170 = vmatprep.mubr.bf16.mxu1 %v3978_v3  ;;  %v3489_v3 = vld [vmem:[#allocation2 + $0x378] ss:$12 sps:$4 sm:$0xff]   ;;  %v3512_v23 = vld [vmem:[#allocation2 + $0xdc] ss:$12 sps:$4 sm:$0xff]  }
 0x115   :  { %1097 = vmatprep.subr.bf16.mxu0 %v3441_v26  ;;  %3280 = vmatprep.subr.bf16.mxu1 %v3442_v27  ;;  %v3513_v26 = vld [vmem:[#allocation2 + $0x318] ss:$12 sps:$4 sm:$0xff]  }
 0x116   :  { %v3518_v27 = vld [vmem:[#allocation2 + $0xc4] ss:$12 sps:$4 sm:$0xff]  }
 0x117   :  { %1098 = vmatpush1.bf16.msra.mxu0 %v3439_v29  ;;  %3281 = vmatpush3.bf16.msra.mxu1 %v3443_v30  ;;  %v3521_v29 = vld [vmem:[#allocation2 + $0x304] ss:$12 sps:$4 sm:$0xff]   ;;  %v3516_v30 = vld [vmem:[#allocation2 + $0xc0] ss:$12 sps:$4 sm:$0xff]  }
 0x118   :  { %1099 = vmatprep.subr.bf16.mxu0 %v3446_v32  ;;  %3282 = vmatprep.subr.bf16.mxu1 %v3447_v33  ;;  %v3519_v32 = vld [vmem:[#allocation2 + $0x300] ss:$12 sps:$4 sm:$0xff]  }
 0x119   :  { %v3524_v33 = vld [vmem:[#allocation2 + $0x46c] ss:$12 sps:$4 sm:$0xff]  }
 0x11b   :  { %1100 = vmatpush1.bf16.msra.mxu0 %v3444_v35  ;;  %3283 = vmatpush3.bf16.msra.mxu1 %v3448_v36  ;;  %v3525_v35 = vld [vmem:[#allocation2 + $0x470] ss:$12 sps:$4 sm:$0xff]   ;;  %v3522_v36 = vld [vmem:[#allocation2 + $0x468] ss:$12 sps:$4 sm:$0xff]  }
 0x11c   :  { %1101 = vmatprep.subr.bf16.mxu0 %v3451_v37  ;;  %3284 = vmatprep.subr.bf16.mxu1 %v3452_v38  ;;  %v3526_v37 = vld [vmem:[#allocation2 + $0x3b0] ss:$12 sps:$4 sm:$0xff]   ;;  %v3529_v38 = vld [vmem:[#allocation2 + $0x454] ss:$12 sps:$4 sm:$0xff]  }
 0x11f   :  { %1102 = vmatpush1.bf16.msra.mxu0 %v3449_v39  ;;  %3285 = vmatpush3.bf16.msra.mxu1 %v3453_v40  ;;  %v3530_v39 = vld [vmem:[#allocation2 + $0x458] ss:$12 sps:$4 sm:$0xff]   ;;  %v3527_v40 = vld [vmem:[#allocation2 + $0x450] ss:$12 sps:$4 sm:$0xff]  }
 0x120   :  { %1103 = vmatprep.subr.bf16.mxu0 %v3456_v41  ;;  %3286 = vmatprep.subr.bf16.mxu1 %v3457_v42  ;;  %v3531_v41 = vld [vmem:[#allocation2 + $0x398] ss:$12 sps:$4 sm:$0xff]   ;;  %v3534_v42 = vld [vmem:[#allocation2 + $0x43c] ss:$12 sps:$4 sm:$0xff]  }
 0x123   :  { %1104 = vmatpush1.bf16.msra.mxu0 %v3454_v43  ;;  %3287 = vmatpush3.bf16.msra.mxu1 %v3458_v44  ;;  %v3535_v43 = vld [vmem:[#allocation2 + $0x440] ss:$12 sps:$4 sm:$0xff]   ;;  %v3532_v44 = vld [vmem:[#allocation2 + $0x438] ss:$12 sps:$4 sm:$0xff]  }
 0x124   :  { %1105 = vmatprep.subr.bf16.mxu0 %v3461_v45  ;;  %3288 = vmatprep.subr.bf16.mxu1 %v3462_v46  ;;  %v3536_v45 = vld [vmem:[#allocation2 + $0x380] ss:$12 sps:$4 sm:$0xff]   ;;  %v3539_v46 = vld [vmem:[#allocation2 + $0x424] ss:$12 sps:$4 sm:$0xff]  }
 0x127   :  { %1106 = vmatpush1.bf16.msra.mxu0 %v3459_v47  ;;  %3289 = vmatpush3.bf16.msra.mxu1 %v3463_v48  ;;  %v3540_v47 = vld [vmem:[#allocation2 + $0x428] ss:$12 sps:$4 sm:$0xff]   ;;  %v3537_v48 = vld [vmem:[#allocation2 + $0x420] ss:$12 sps:$4 sm:$0xff]  }
 0x128   :  { %1107 = vmatprep.subr.bf16.mxu0 %v3466_v49  ;;  %3290 = vmatprep.subr.bf16.mxu1 %v3467_v50  ;;  %v3541_v49 = vld [vmem:[#allocation2 + $0x368] ss:$12 sps:$4 sm:$0xff]   ;;  %v3544_v50 = vld [vmem:[#allocation2 + $0x40c] ss:$12 sps:$4 sm:$0xff]  }
 0x12b   :  { %1108 = vmatpush1.bf16.msra.mxu0 %v3464_v51  ;;  %3291 = vmatpush3.bf16.msra.mxu1 %v3468_v52  ;;  %v3545_v51 = vld [vmem:[#allocation2 + $0x410] ss:$12 sps:$4 sm:$0xff]   ;;  %v3542_v52 = vld [vmem:[#allocation2 + $0x408] ss:$12 sps:$4 sm:$0xff]  }
 0x12c   :  { %1109 = vmatprep.subr.bf16.mxu0 %v3471_v53  ;;  %3292 = vmatprep.subr.bf16.mxu1 %v3472_v54  ;;  %v3546_v53 = vld [vmem:[#allocation2 + $0x350] ss:$12 sps:$4 sm:$0xff]   ;;  %v3549_v54 = vld [vmem:[#allocation2 + $0x3f4] ss:$12 sps:$4 sm:$0xff]  }
 0x12f   :  { %1110 = vmatpush1.bf16.msra.mxu0 %v3469_v55  ;;  %3293 = vmatpush3.bf16.msra.mxu1 %v3473_v56  ;;  %v3550_v55 = vld [vmem:[#allocation2 + $0x3f8] ss:$12 sps:$4 sm:$0xff]   ;;  %v3547_v56 = vld [vmem:[#allocation2 + $0x3f0] ss:$12 sps:$4 sm:$0xff]  }
 0x130   :  { %1111 = vmatprep.subr.bf16.mxu0 %v3476_v57  ;;  %1512 = vmatprep.subr.bf16.mxu1 %v3479_v58  ;;  %v3551_v57 = vld [vmem:[#allocation2 + $0x338] ss:$12 sps:$4 sm:$0xff]   ;;  %v3554_v58 = vld [vmem:[#allocation2 + $0x3dc] ss:$12 sps:$4 sm:$0xff]  }
 0x132   :  { %1171 = vmatmul.mubr.bf16.vlgmr.msra.gmra.mxu1 %v3976_v61 }
 0x133   :  { %1112 = vmatpush2.bf16.msra.mxu0 %v3474_v60  ;;  %1513 = vmatpush1.bf16.msra.mxu1 %v3477_v62  ;;  %v3552_v60 = vld [vmem:[#allocation2 + $0x3d8] ss:$12 sps:$4 sm:$0xff]   ;;  %v3556_v62 = vld [vmem:[#allocation2 + $0x320] ss:$12 sps:$4 sm:$0xff]  }
 0x134   :  { %1544 = vmatprep.mubr.bf16.mxu1 %v3998_v4  ;;  %1113 = vmatprep.subr.bf16.mxu0 %v3482_v63  ;;  %v3559_v63 = vld [vmem:[#allocation2 + $0x3c4] ss:$12 sps:$4 sm:$0xff]  }
 0x135   :  { %1514 = vmatprep.subr.bf16.mxu1 %v3485_v2  ;;  %v3557_v2 = vld [vmem:[#allocation2 + $0x3c0] ss:$12 sps:$4 sm:$0xff]  }
 0x137   :  { %1114 = vmatpush2.bf16.msra.mxu0 %v3480_v5  ;;  %1515 = vmatpush1.bf16.msra.mxu1 %v3483_v6  ;;  %v1249_v5 = vrot.slane %v3981_v8, 1  ;;  %v1248_v6 = vrot.slane %v3976_v61, 1  ;;  %v3568_v8 = vld [vmem:[#allocation5 + $0xf0] ss:$24 sps:$4 sm:$0xff]  }
 0x138   :  { %1115 = vmatprep.subr.bf16.mxu0 %v3488_v7  ;;  %1516 = vmatprep.subr.bf16.mxu1 %v3491_v9  ;;  %v3562_v9 = vld [vmem:[#allocation5 + $0x150] ss:$24 sps:$4 sm:$0xff]  }
 0x139   :  { %v1250_v7 = vsel %vm235_vm3, %v1248_v6, %v1249_v5 }
 0x13b   :  { %1116 = vmatpush2.bf16.msra.mxu0 %v3486_v10  ;;  %1517 = vmatpush1.bf16.msra.mxu1 %v3489_v3  ;;  %v3564_v10 = vld [vmem:[#allocation5 + $0x154] ss:$24 sps:$4 sm:$0xff]   ;;  %v3567_v3 = vld [vmem:[#allocation5 + $0x124] ss:$24 sps:$4 sm:$0xff]  }
 0x13c   :  { %1117 = vmatprep.subr.bf16.mxu0 %v3494_v11  ;;  %1518 = vmatprep.subr.bf16.mxu1 %v3497_v12  ;;  %v3565_v11 = vld [vmem:[#allocation5 + $0x120] ss:$24 sps:$4 sm:$0xff]   ;;  %v3570_v12 = vld [vmem:[#allocation5 + $0xf4] ss:$24 sps:$4 sm:$0xff]  }
 0x13f   :  { %1118 = vmatpush2.bf16.msra.mxu0 %v3492_v13  ;;  %1519 = vmatpush1.bf16.msra.mxu1 %v3495_v14  ;;  %v3573_v13 = vld [vmem:[#allocation5 + $0xc4] ss:$24 sps:$4 sm:$0xff]   ;;  %v3576_v14 = vld [vmem:[#allocation5 + $0x94] ss:$24 sps:$4 sm:$0xff]  }
 0x140   :  { %1119 = vmatprep.subr.bf16.mxu0 %v3500_v15  ;;  %1520 = vmatprep.subr.bf16.mxu1 %v3503_v16  ;;  %v3574_v15 = vld [vmem:[#allocation5 + $0x90] ss:$24 sps:$4 sm:$0xff]   ;;  %v3579_v16 = vld [vmem:[#allocation5 + $0x64] ss:$24 sps:$4 sm:$0xff]  }
 0x143   :  { %1120 = vmatpush2.bf16.msra.mxu0 %v3498_v17  ;;  %1521 = vmatpush1.bf16.msra.mxu1 %v3501_v18  ;;  %v3577_v17 = vld [vmem:[#allocation5 + $0x60] ss:$24 sps:$4 sm:$0xff]   ;;  %v3582_v18 = vld [vmem:[#allocation5 + $0x34] ss:$24 sps:$4 sm:$0xff]  }
 0x144   :  { %1121 = vmatprep.subr.bf16.mxu0 %v3506_v19  ;;  %1522 = vmatprep.subr.bf16.mxu1 %v3509_v20  ;;  %v3580_v19 = vld [vmem:[#allocation5 + $0x30] ss:$24 sps:$4 sm:$0xff]   ;;  %v3585_v20 = vld [vmem:[#allocation5 + $0x4] ss:$24 sps:$4 sm:$0xff]  }
 0x147   :  { %1122 = vmatpush2.bf16.msra.mxu0 %v3504_v21  ;;  %1523 = vmatpush1.bf16.msra.mxu1 %v3507_v22  ;;  %v3589_v21 = vld [vmem:[#allocation5 + $0x450] ss:$24 sps:$4 sm:$0xff]   ;;  %v3583_v22 = vld [vmem:[#allocation5] ss:$24 sps:$4 sm:$0xff]  }
 0x148   :  { %1123 = vmatprep.subr.bf16.mxu0 %v3512_v23  ;;  %1524 = vmatprep.subr.bf16.mxu1 %v3515_v24  ;;  %v3591_v23 = vld [vmem:[#allocation5 + $0x454] ss:$24 sps:$4 sm:$0xff]  }
 0x149   :  { %v3588_v24 = vld [vmem:[#allocation5 + $0x2d4] ss:$24 sps:$4 sm:$0xff]  }
 0x14b   :  { %1124 = vmatpush2.bf16.msra.mxu0 %v3510_v25  ;;  %1525 = vmatpush1.bf16.msra.mxu1 %v3513_v26  ;;  %v3597_v25 = vld [vmem:[#allocation5 + $0x424] ss:$24 sps:$4 sm:$0xff]   ;;  %v3595_v26 = vld [vmem:[#allocation5 + $0x420] ss:$24 sps:$4 sm:$0xff]  }
 0x14c   :  { %1125 = vmatprep.subr.bf16.mxu0 %v3518_v27  ;;  %1526 = vmatprep.subr.bf16.mxu1 %v3521_v29  ;;  %v3586_v27 = vld [vmem:[#allocation5 + $0x2d0] ss:$24 sps:$4 sm:$0xff]   ;;  %v3603_v29 = vld [vmem:[#allocation5 + $0x3f4] ss:$24 sps:$4 sm:$0xff]  }
 0x14f   :  { %1126 = vmatpush2.bf16.msra.mxu0 %v3516_v30  ;;  %1527 = vmatpush1.bf16.msra.mxu1 %v3519_v32  ;;  %v3594_v30 = vld [vmem:[#allocation5 + $0x2a4] ss:$24 sps:$4 sm:$0xff]   ;;  %v3601_v32 = vld [vmem:[#allocation5 + $0x3f0] ss:$24 sps:$4 sm:$0xff]  }
 0x150   :  { %1528 = vmatprep.subr.bf16.mxu1 %v3524_v33  ;;  %3300 = vmatprep.subr.bf16.mxu0 %v3525_v35  ;;  %v3592_v33 = vld [vmem:[#allocation5 + $0x2a0] ss:$24 sps:$4 sm:$0xff]   ;;  %v3609_v35 = vld [vmem:[#allocation5 + $0x3c4] ss:$24 sps:$4 sm:$0xff]  }
 0x152   :  { %1128 = vmatmul.mubr.bf16.vlgmr.msra.gmra.mxu0 %v3976_v61  ;;  %v3571_v61 = vld [vmem:[#allocation5 + $0xc0] ss:$24 sps:$4 sm:$0xff]  }
 0x153   :  { %1529 = vmatpush2.bf16.msra.mxu1 %v3522_v36  ;;  %3301 = vmatpush3.bf16.msra.mxu0 %v3526_v37  ;;  %v3600_v36 = vld [vmem:[#allocation5 + $0x274] ss:$24 sps:$4 sm:$0xff]   ;;  %v3607_v37 = vld [vmem:[#allocation5 + $0x3c0] ss:$24 sps:$4 sm:$0xff]  }
 0x154   :  { %1587 = vmatprep.mubr.bf16.mxu0 %v3998_v4  ;;  %1530 = vmatprep.subr.bf16.mxu1 %v3529_v38  ;;  %v3561_v4 = vld [vmem:[#allocation2 + $0x308] ss:$12 sps:$4 sm:$0xff]  }
 0x155   :  { %3302 = vmatprep.subr.bf16.mxu0 %v3530_v39  ;;  %v3598_v38 = vld [vmem:[#allocation5 + $0x270] ss:$24 sps:$4 sm:$0xff]   ;;  %v3606_v39 = vld [vmem:[#allocation5 + $0x244] ss:$24 sps:$4 sm:$0xff]  }
 0x157   :  { %1531 = vmatpush2.bf16.msra.mxu1 %v3527_v40  ;;  %3303 = vmatpush3.bf16.msra.mxu0 %v3531_v41  ;;  %v3604_v40 = vld [vmem:[#allocation5 + $0x240] ss:$24 sps:$4 sm:$0xff]   ;;  %v3612_v41 = vld [vmem:[#allocation5 + $0x214] ss:$24 sps:$4 sm:$0xff]  }
 0x158   :  { %1532 = vmatprep.subr.bf16.mxu1 %v3534_v42  ;;  %3304 = vmatprep.subr.bf16.mxu0 %v3535_v43  ;;  %v3610_v42 = vld [vmem:[#allocation5 + $0x210] ss:$24 sps:$4 sm:$0xff]   ;;  %v3615_v43 = vld [vmem:[#allocation5 + $0x394] ss:$24 sps:$4 sm:$0xff]  }
 0x15b   :  { %1533 = vmatpush2.bf16.msra.mxu1 %v3532_v44  ;;  %3305 = vmatpush3.bf16.msra.mxu0 %v3536_v45  ;;  %v3613_v44 = vld [vmem:[#allocation5 + $0x390] ss:$24 sps:$4 sm:$0xff]   ;;  %v3618_v45 = vld [vmem:[#allocation5 + $0x1e4] ss:$24 sps:$4 sm:$0xff]  }
 0x15c   :  { %1534 = vmatprep.subr.bf16.mxu1 %v3539_v46  ;;  %3306 = vmatprep.subr.bf16.mxu0 %v3540_v47  ;;  %v3616_v46 = vld [vmem:[#allocation5 + $0x1e0] ss:$24 sps:$4 sm:$0xff]   ;;  %v3621_v47 = vld [vmem:[#allocation5 + $0x364] ss:$24 sps:$4 sm:$0xff]  }
 0x15f   :  { %1535 = vmatpush2.bf16.msra.mxu1 %v3537_v48  ;;  %3307 = vmatpush3.bf16.msra.mxu0 %v3541_v49  ;;  %v3619_v48 = vld [vmem:[#allocation5 + $0x360] ss:$24 sps:$4 sm:$0xff]   ;;  %v3624_v49 = vld [vmem:[#allocation5 + $0x1b4] ss:$24 sps:$4 sm:$0xff]  }
 0x160   :  { %1536 = vmatprep.subr.bf16.mxu1 %v3544_v50  ;;  %3308 = vmatprep.subr.bf16.mxu0 %v3545_v51  ;;  %v3622_v50 = vld [vmem:[#allocation5 + $0x1b0] ss:$24 sps:$4 sm:$0xff]   ;;  %v3627_v51 = vld [vmem:[#allocation5 + $0x334] ss:$24 sps:$4 sm:$0xff]  }
 0x163   :  { %1537 = vmatpush2.bf16.msra.mxu1 %v3542_v52  ;;  %3309 = vmatpush3.bf16.msra.mxu0 %v3546_v53  ;;  %v3625_v52 = vld [vmem:[#allocation5 + $0x330] ss:$24 sps:$4 sm:$0xff]   ;;  %v3630_v53 = vld [vmem:[#allocation5 + $0x184] ss:$24 sps:$4 sm:$0xff]  }
 0x164   :  { %1538 = vmatprep.subr.bf16.mxu1 %v3549_v54  ;;  %3310 = vmatprep.subr.bf16.mxu0 %v3550_v55  ;;  %v3628_v54 = vld [vmem:[#allocation5 + $0x180] ss:$24 sps:$4 sm:$0xff]   ;;  %v3633_v55 = vld [vmem:[#allocation5 + $0x304] ss:$24 sps:$4 sm:$0xff]  }
 0x167   :  { %1539 = vmatpush2.bf16.msra.mxu1 %v3547_v56  ;;  %3311 = vmatpush3.bf16.msra.mxu0 %v3551_v57  ;;  %v3631_v56 = vld [vmem:[#allocation5 + $0x300] ss:$24 sps:$4 sm:$0xff]   ;;  %v3636_v57 = vld [vmem:[#allocation5 + $0x45c] ss:$24 sps:$4 sm:$0xff]  }
 0x168   :  { %1540 = vmatprep.subr.bf16.mxu1 %v3554_v58  ;;  %3312 = vmatprep.subr.bf16.mxu0 %v3555_v59  ;;  %v3639_v58 = vld [vmem:[#allocation5 + $0x15c] ss:$24 sps:$4 sm:$0xff]  }
 0x16b   :  { %1541 = vmatpush2.bf16.msra.mxu1 %v3552_v60  ;;  %3313 = vmatpush3.bf16.msra.mxu0 %v3556_v62 }
 0x16c   :  { %1542 = vmatprep.subr.bf16.mxu1 %v3559_v63  ;;  %3314 = vmatprep.subr.bf16.mxu0 %v3560_v1 }
 0x16f   :  { %1543 = vmatpush2.bf16.msra.mxu1 %v3557_v2  ;;  %3315 = vmatpush3.bf16.msra.mxu0 %v3561_v4 }
 0x170   :  { %2498 = vmatprep.subr.bf16.mxu0 %v3564_v10  ;;  %2541 = vmatprep.subr.bf16.mxu1 %v3591_v23 }
 0x172   :  { %1545 = vmatmul.mubr.bf16.vlgmr.msra.gmra.mxu1 %v1250_v7  ;;  %1588 = vmatmul.mubr.bf16.vlgmr.msra.gmra.mxu0 %v1250_v7 }
 0x173   :  { %2573 = vmatprep.mubr.bf16.mxu1 %v3858_v0  ;;  %2499 = vmatpush1.bf16.msra.mxu0 %v3562_v9 }
 0x174   :  { %2500 = vmatprep.subr.bf16.mxu0 %v3567_v3  ;;  %2542 = vmatpush1.bf16.msra.mxu1 %v3589_v21  ;;  %v1614_v21 = vsub.s32 2, %v3965_v28 }
 0x175   :  { %2543 = vmatprep.subr.bf16.mxu1 %v3597_v25 }
 0x177   :  { %2501 = vmatpush1.bf16.msra.mxu0 %v3565_v11 }
 0x178   :  { %2502 = vmatprep.subr.bf16.mxu0 %v3570_v12  ;;  %2544 = vmatpush1.bf16.msra.mxu1 %v3595_v26 }
 0x179   :  { %2545 = vmatprep.subr.bf16.mxu1 %v3603_v29 }
 0x17b   :  { %2503 = vmatpush1.bf16.msra.mxu0 %v3568_v8 }
 0x17c   :  { %2504 = vmatprep.subr.bf16.mxu0 %v3573_v13  ;;  %2546 = vmatpush1.bf16.msra.mxu1 %v3601_v32 }
 0x17d   :  { %2547 = vmatprep.subr.bf16.mxu1 %v3609_v35 }
 0x17f   :  { %2505 = vmatpush1.bf16.msra.mxu0 %v3571_v61 }
 0x180   :  { %2506 = vmatprep.subr.bf16.mxu0 %v3576_v14  ;;  %2548 = vmatpush1.bf16.msra.mxu1 %v3607_v37 }
 0x181   :  { %2549 = vmatprep.subr.bf16.mxu1 %v3615_v43 }
 0x183   :  { %2507 = vmatpush1.bf16.msra.mxu0 %v3574_v15 }
 0x184   :  { %2508 = vmatprep.subr.bf16.mxu0 %v3579_v16  ;;  %2550 = vmatpush1.bf16.msra.mxu1 %v3613_v44  ;;  %v1602_v16 = vld [vmem:[%s4069_s4] sm:$0x7] }
 0x185   :  { %2551 = vmatprep.subr.bf16.mxu1 %v3621_v47 }
 0x187   :  { %2509 = vmatpush1.bf16.msra.mxu0 %v3577_v17 }
 0x188   :  { %2510 = vmatprep.subr.bf16.mxu0 %v3582_v18  ;;  %2552 = vmatpush1.bf16.msra.mxu1 %v3619_v48 }
 0x189   :  { %2553 = vmatprep.subr.bf16.mxu1 %v3627_v51 }
 0x18b   :  { %2511 = vmatpush1.bf16.msra.mxu0 %v3580_v19 }
 0x18c   :  { %2512 = vmatprep.subr.bf16.mxu0 %v3585_v20  ;;  %2554 = vmatpush1.bf16.msra.mxu1 %v3625_v52 }
 0x18d   :  { %2555 = vmatprep.subr.bf16.mxu1 %v3633_v55 }
 0x18f   :  { %2513 = vmatpush1.bf16.msra.mxu0 %v3583_v22 }
 0x190   :  { %2514 = vmatprep.subr.bf16.mxu0 %v3588_v24  ;;  %2556 = vmatpush1.bf16.msra.mxu1 %v3631_v56  ;;  %v1611_v24 = vrot.slane %v1602_v16, %v324_v34 }
 0x191   :  { %2584 = vmatprep.subr.bf16.mxu1 %v3639_v58  ;;  %v3642_v58 = vld [vmem:[#allocation5 + $0x42c] ss:$24 sps:$4 sm:$0xff]  }
 0x193   :  { %2515 = vmatpush2.bf16.msra.mxu0 %v3586_v27 }
 0x194   :  { %2516 = vmatprep.subr.bf16.mxu0 %v3594_v30  ;;  %v1607_v30 = vrot.slane %v1602_v16, %v320_v31 }
 0x197   :  { %2517 = vmatpush2.bf16.msra.mxu0 %v3592_v33 }
 0x198   :  { %2518 = vmatprep.subr.bf16.mxu0 %v3600_v36 }
 0x19b   :  { %2519 = vmatpush2.bf16.msra.mxu0 %v3598_v38 }
 0x19c   :  { %2520 = vmatprep.subr.bf16.mxu0 %v3606_v39  ;;  %v1615_v39 = vrot.slane %v1602_v16, %v1614_v21  ;;  %v3672_v16 = vld [vmem:[#allocation5 + $0x33c] ss:$24 sps:$4 sm:$0xff]   ;;  %v3673_v21 = vld [vmem:[#allocation5 + $0x38] ss:$24 sps:$4 sm:$0xff]  }
 0x19f   :  { %2521 = vmatpush2.bf16.msra.mxu0 %v3604_v40 }
 0x1a0   :  { %2522 = vmatprep.subr.bf16.mxu0 %v3612_v41 }
 0x1a3   :  { %2523 = vmatpush2.bf16.msra.mxu0 %v3610_v42 }
 0x1a4   :  { %2524 = vmatprep.subr.bf16.mxu0 %v3618_v45 }
 0x1a7   :  { %2525 = vmatpush2.bf16.msra.mxu0 %v3616_v46 }
 0x1a8   :  { %2526 = vmatprep.subr.bf16.mxu0 %v3624_v49 }
 0x1ab   :  { %2527 = vmatpush2.bf16.msra.mxu0 %v3622_v50 }
 0x1ac   :  { %2528 = vmatprep.subr.bf16.mxu0 %v3630_v53 }
 0x1af   :  { %2529 = vmatpush2.bf16.msra.mxu0 %v3628_v54  ;;  %v3634_v54 = vld [vmem:[#allocation5 + $0x458] ss:$24 sps:$4 sm:$0xff]  }
 0x1b0   :  { %2627 = vmatprep.subr.bf16.mxu0 %v3636_v57 }
 0x1d2   :  { %v789_v59 = vpop.f32.mrf.mxu1  ;;  %v3272_v60 = vpop.f32.mrf.mxu0 }
 0x1d4   :  { %v791_v62 = vpop.f32.mrf.mxu1  ;;  %v3273_v63 = vpop.f32.mrf.mxu0 }
 0x1d5   :  { %v3274_v17 = vadd.f32 %v3273_v63, %v3272_v60  ;;  %v3640_v63 = vld [vmem:[#allocation5 + $0x428] ss:$24 sps:$4 sm:$0xff]  }
 0x1d6   :  { %v793_v1 = vpop.f32.mrf.mxu1  ;;  %v3275_v2 = vpop.f32.mrf.mxu0 }
 0x1d8   :  { %v795_v4 = vpop.f32.mrf.mxu1  ;;  %v3276_v5 = vpop.f32.mrf.mxu0 }
 0x1d9   :  { %v3277_v37 = vadd.f32 %v3276_v5, %v3275_v2  ;;  %v3643_v2 = vld [vmem:[#allocation5 + $0x128] ss:$24 sps:$4 sm:$0xff]   ;;  %v3646_v5 = vld [vmem:[#allocation5 + $0x3f8] ss:$24 sps:$4 sm:$0xff]  }
 0x1f2   :  { %v3294_v6 = vpop.f32.mrf.mxu1 }
 0x1f4   :  { %v3295_v9 = vpop.f32.mrf.mxu1 }
 0x1f5   :  { %v3296_v13 = vadd.f32 %v3295_v9, %v3294_v6  ;;  %v3654_v6 = vld [vmem:[#allocation5 + $0x3cc] ss:$24 sps:$4 sm:$0xff]  }
 0x1f6   :  { %v3297_v3 = vpop.f32.mrf.mxu1  ;;  %v3657_v9 = vld [vmem:[#allocation5 + $0xcc] ss:$24 sps:$4 sm:$0xff]  }
 0x1f7   :  { %v1173_v26 = vadd.f32 %v3296_v13, %v3274_v17  ;;  %v3666_v13 = vld [vmem:[#allocation5 + $0x36c] ss:$24 sps:$4 sm:$0xff]   ;;  %v3667_v17 = vld [vmem:[#allocation5 + $0x68] ss:$24 sps:$4 sm:$0xff]  }
 0x1f8   :  { %v3298_v12 = vpop.f32.mrf.mxu1 }
 0x1f9   :  { %v3299_v27 = vadd.f32 %v3298_v12, %v3297_v3  ;;  %v3660_v3 = vld [vmem:[#allocation5 + $0x39c] ss:$24 sps:$4 sm:$0xff]  }
 0x1fa   :  { %v3663_v12 = vld [vmem:[#allocation5 + $0x9c] ss:$24 sps:$4 sm:$0xff]  }
 0x1fb   :  { %v1176_v34 = vadd.f32 %v3299_v27, %v3277_v37  ;;  %v3682_v27 = vld [vmem:[#allocation5 + $0x160] ss:$24 sps:$4 sm:$0xff]   ;;  %v3699_v37 = vld [vmem:[#allocation5 + $0x27c] ss:$24 sps:$4 sm:$0xff]  }
 0x212   :  { %v1129_v7 = vpop.f32.mrf.mxu0 }
 0x213   :  { %v1130_v18 = vadd.f32 %v1129_v7, %v789_v59  ;;  %v3637_v59 = vld [vmem:[#allocation5 + $0x158] ss:$24 sps:$4 sm:$0xff]  }
 0x214   :  { %v1131_v10 = vpop.f32.mrf.mxu0  ;;  %v3649_v7 = vld [vmem:[#allocation5 + $0xf8] ss:$24 sps:$4 sm:$0xff]  }
 0x215   :  { %v1132_v15 = vadd.f32 %v1131_v10, %v791_v62  ;;  %v3645_v62 = vld [vmem:[#allocation5 + $0x12c] ss:$24 sps:$4 sm:$0xff]   ;;  %v3652_v10 = vld [vmem:[#allocation5 + $0x3c8] ss:$24 sps:$4 sm:$0xff]  }
 0x216   :  { %v1133_v11 = vpop.f32.mrf.mxu0 }
 0x217   :  { %v1134_v22 = vadd.f32 %v1133_v11, %v793_v1  ;;  %v3648_v1 = vld [vmem:[#allocation5 + $0x3fc] ss:$24 sps:$4 sm:$0xff]   ;;  %v3655_v11 = vld [vmem:[#allocation5 + $0xc8] ss:$24 sps:$4 sm:$0xff]  }
 0x218   :  { %v1135_v8 = vpop.f32.mrf.mxu0 }
 0x219   :  { %v1136_v35 = vadd.f32 %v1135_v8, %v795_v4  ;;  %v3651_v4 = vld [vmem:[#allocation5 + $0xfc] ss:$24 sps:$4 sm:$0xff]   ;;  %v3658_v8 = vld [vmem:[#allocation5 + $0x398] ss:$24 sps:$4 sm:$0xff]  }
 0x232   :  { %v1546_v61 = vpop.f32.mrf.mxu1  ;;  %v3316_v14 = vpop.f32.mrf.mxu0 }
 0x233   :  { %v1596_v29 = vadd.f32 %v1546_v61, %v1130_v18  ;;  %v3661_v61 = vld [vmem:[#allocation5 + $0x98] ss:$24 sps:$4 sm:$0xff]   ;;  %v3675_v18 = vld [vmem:[#allocation5 + $0x3c] ss:$24 sps:$4 sm:$0xff]  }
 0x234   :  { %v1548_v19 = vpop.f32.mrf.mxu1  ;;  %v3317_v20 = vpop.f32.mrf.mxu0 }
 0x235   :  { %v1597_v23 = vadd.f32 %v1548_v19, %v1132_v15  ;;  %v3318_v25 = vadd.f32 %v3317_v20, %v3316_v14  ;;  %v1619_v45 = vadd.f32 %v1607_v30, %v1596_v29  ;;  %v3669_v14 = vld [vmem:[#allocation5 + $0x6c] ss:$24 sps:$4 sm:$0xff]   ;;  %v3664_v15 = vld [vmem:[#allocation5 + $0x368] ss:$24 sps:$4 sm:$0xff]   ;;  %v3670_v19 = vld [vmem:[#allocation5 + $0x338] ss:$24 sps:$4 sm:$0xff]  }
 0x236   :  { %v1550_v32 = vpop.f32.mrf.mxu1  ;;  %v3319_v33 = vpop.f32.mrf.mxu0  ;;  %v3678_v20 = vld [vmem:[#allocation5 + $0x30c] ss:$24 sps:$4 sm:$0xff]  }
 0x237   :  { %v1599_v36 = vadd.f32 %v1550_v32, %v1134_v22  ;;  %v1598_v38 = vadd.f32 %v3318_v25, %v1173_v26  ;;  %v1620_v42 = vadd.f32 %v1611_v24, %v1597_v23  ;;  %v1625_v51 = vmax.f32 %v1619_v45, 0.0  ;;  %v3681_v22 = vld [vmem:[#allocation5 + $0xc] ss:$24 sps:$4 sm:$0xff]   ;;  %v3676_v23 = vld [vmem:[#allocation5 + $0x308] ss:$24 sps:$4 sm:$0xff]  }
 0x238   :  { %v1552_v40 = vpop.f32.mrf.mxu1  ;;  %v3320_v41 = vpop.f32.mrf.mxu0  ;;  %v3679_v25 = vld [vmem:[#allocation5 + $0x8] ss:$24 sps:$4 sm:$0xff]   ;;  %v3687_v26 = vld [vmem:[#allocation5 + $0x2dc] ss:$24 sps:$4 sm:$0xff]   ;;  %v3693_v32 = vld [vmem:[#allocation5 + $0x2ac] ss:$24 sps:$4 sm:$0xff]  }
 0x239   :  { %v1622_v43 = vadd.f32 %v1607_v30, %v1599_v36  ;;  %v1600_v44 = vadd.f32 %v1552_v40, %v1136_v35  ;;  %v3321_v46 = vadd.f32 %v3320_v41, %v3319_v33  ;;  %v1621_v48 = vadd.f32 %v1615_v39, %v1598_v38  ;;  %v3690_v29 = vld [vmem:[#allocation5 + $0x134] ss:$24 sps:$4 sm:$0xff]   ;;  %v3685_v30 = vld [vmem:[#allocation5 + $0x2d8] ss:$24 sps:$4 sm:$0xff]   ;;  %v3696_v35 = vld [vmem:[#allocation5 + $0x104] ss:$24 sps:$4 sm:$0xff]  }
 0x23a   :  { %v1626_v31 = vmax.f32 %v1620_v42, 0.0  ;;  %v3688_v33 = vld [vmem:[#allocation5 + $0x130] ss:$24 sps:$4 sm:$0xff]   ;;  %v3694_v38 = vld [vmem:[#allocation5 + $0x100] ss:$24 sps:$4 sm:$0xff]  }
 0x23b   :  { %v1623_v47 = vadd.f32 %v1611_v24, %v1600_v44  ;;  %v1628_v49 = vmax.f32 %v1622_v43, 0.0  ;;  %v1601_v28 = vadd.f32 %v3321_v46, %v1176_v34  ;;  %v1627_v55 = vmax.f32 %v1621_v48, 0.0  ;;  %v3684_v24 = vld [vmem:[#allocation5 + $0x164] ss:$24 sps:$4 sm:$0xff]   ;;  %v3691_v36 = vld [vmem:[#allocation5 + $0x2a8] ss:$24 sps:$4 sm:$0xff]  }
 0x23c   :  { %v3697_v40 = vld [vmem:[#allocation5 + $0x278] ss:$24 sps:$4 sm:$0xff]   ;;  %v3705_v41 = vld [vmem:[#allocation5 + $0x24c] ss:$24 sps:$4 sm:$0xff]   ;;  %v3703_v44 = vld [vmem:[#allocation5 + $0x248] ss:$24 sps:$4 sm:$0xff]  }
 0x23d   :  { %v1629_v50 = vmax.f32 %v1623_v47, 0.0  ;;  %v1624_v52 = vadd.f32 %v1615_v39, %v1601_v28  ;;  %v4017_v56 = vpack.c.bf16 %v1628_v49, %v1625_v51  ;;  %v3702_v39 = vld [vmem:[#allocation5 + $0xd4] ss:$24 sps:$4 sm:$0xff]   ;;  %v3700_v42 = vld [vmem:[#allocation5 + $0xd0] ss:$24 sps:$4 sm:$0xff]  }
 0x23e   :  { %v3708_v43 = vld [vmem:[#allocation5 + $0xa4] ss:$24 sps:$4 sm:$0xff]   ;;  %v3706_v45 = vld [vmem:[#allocation5 + $0xa0] ss:$24 sps:$4 sm:$0xff]   ;;  %v3714_v46 = vld [vmem:[#allocation5 + $0x74] ss:$24 sps:$4 sm:$0xff]  }
 0x23f   :  { %v4015_v53 = vpack.c.bf16 %v1629_v50, %v1626_v31  ;;  %v1630_v57 = vmax.f32 %v1624_v52, 0.0  ;;  %v3711_v34 = vld [vmem:[#allocation5 + $0x21c] ss:$24 sps:$4 sm:$0xff]   ;;  %v3709_v47 = vld [vmem:[#allocation5 + $0x218] ss:$24 sps:$4 sm:$0xff]  }
 0x240   :  { %v3717_v48 = vld [vmem:[#allocation5 + $0x1ec] ss:$24 sps:$4 sm:$0xff]   ;;  %v3712_v49 = vld [vmem:[#allocation5 + $0x70] ss:$24 sps:$4 sm:$0xff]   ;;  %v3723_v50 = vld [vmem:[#allocation5 + $0x1bc] ss:$24 sps:$4 sm:$0xff]  }
 0x241   :  { %2530 = vmatprep.mubr.bf16.mxu0 %v4015_v53  ;;  %v4020_v60 = vpack.c.bf16 %v1630_v57, %v1627_v55  ;;  %v3720_v28 = vld [vmem:[#allocation5 + $0x44] ss:$24 sps:$4 sm:$0xff]   ;;  %v3715_v31 = vld [vmem:[#allocation5 + $0x1e8] ss:$24 sps:$4 sm:$0xff]   ;;  %v3726_v52 = vld [vmem:[#allocation5 + $0x14] ss:$24 sps:$4 sm:$0xff]  }
 0x242   :  { %2531 = vmatmul.mubr.bf16.vlgmr.msra.gmra.mxu0 %v4017_v56  ;;  %v3718_v51 = vld [vmem:[#allocation5 + $0x40] ss:$24 sps:$4 sm:$0xff]   ;;  %v3724_v55 = vld [vmem:[#allocation5 + $0x10] ss:$24 sps:$4 sm:$0xff]   ;;  %v3732_v57 = vld [vmem:[#allocation5 + $0x2e4] ss:$24 sps:$4 sm:$0xff]  }
 0x243   :  { %2628 = vmatpush1.bf16.msra.mxu0 %v3634_v54  ;;  %2659 = vmatprep.mubr.bf16.mxu0 %v3858_v0  ;;  %v3729_v54 = vld [vmem:[#allocation5 + $0x18c] ss:$24 sps:$4 sm:$0xff]  }
 0x244   :  { %2574 = vmatmul.mubr.bf16.vlgmr.msra.gmra.mxu1 %v4020_v60  ;;  %2629 = vmatprep.subr.bf16.mxu0 %v3642_v58  ;;  %v3727_v58 = vld [vmem:[#allocation5 + $0x188] ss:$24 sps:$4 sm:$0xff]  }
 0x245   :  { %2585 = vmatpush1.bf16.msra.mxu1 %v3637_v59  ;;  %2616 = vmatprep.mubr.bf16.mxu1 %v4015_v53  ;;  %v3735_v59 = vld [vmem:[#allocation5 + $0x464] ss:$24 sps:$4 sm:$0xff]  }
 0x246   :  { %2586 = vmatprep.subr.bf16.mxu1 %v3645_v62  ;;  %v3730_v62 = vld [vmem:[#allocation5 + $0x2e0] ss:$24 sps:$4 sm:$0xff]  }
 0x247   :  { %2630 = vmatpush1.bf16.msra.mxu0 %v3640_v63  ;;  %v3738_v63 = vld [vmem:[#allocation5 + $0x2b4] ss:$24 sps:$4 sm:$0xff]  }
 0x248   :  { %2631 = vmatprep.subr.bf16.mxu0 %v3648_v1  ;;  %v3733_v1 = vld [vmem:[#allocation5 + $0x460] ss:$24 sps:$4 sm:$0xff]  }
 0x249   :  { %2587 = vmatpush1.bf16.msra.mxu1 %v3643_v2  ;;  %v3741_v2 = vld [vmem:[#allocation5 + $0x434] ss:$24 sps:$4 sm:$0xff]  }
 0x24a   :  { %2588 = vmatprep.subr.bf16.mxu1 %v3651_v4  ;;  %v3736_v4 = vld [vmem:[#allocation5 + $0x2b0] ss:$24 sps:$4 sm:$0xff]  }
 0x24b   :  { %2632 = vmatpush1.bf16.msra.mxu0 %v3646_v5  ;;  %v3744_v5 = vld [vmem:[#allocation5 + $0x284] ss:$24 sps:$4 sm:$0xff]  }
 0x24c   :  { %2633 = vmatprep.subr.bf16.mxu0 %v3654_v6  ;;  %v3739_v6 = vld [vmem:[#allocation5 + $0x430] ss:$24 sps:$4 sm:$0xff]  }
 0x24d   :  { %2589 = vmatpush1.bf16.msra.mxu1 %v3649_v7  ;;  %v3747_v7 = vld [vmem:[#allocation5 + $0x404] ss:$24 sps:$4 sm:$0xff]  }
 0x24e   :  { %2590 = vmatprep.subr.bf16.mxu1 %v3657_v9  ;;  %v3742_v9 = vld [vmem:[#allocation5 + $0x280] ss:$24 sps:$4 sm:$0xff]  }
 0x24f   :  { %2634 = vmatpush1.bf16.msra.mxu0 %v3652_v10  ;;  %v3750_v10 = vld [vmem:[#allocation5 + $0x254] ss:$24 sps:$4 sm:$0xff]  }
 0x250   :  { %2635 = vmatprep.subr.bf16.mxu0 %v3660_v3  ;;  %v3745_v3 = vld [vmem:[#allocation5 + $0x400] ss:$24 sps:$4 sm:$0xff]  }
 0x251   :  { %2591 = vmatpush1.bf16.msra.mxu1 %v3655_v11  ;;  %v3753_v11 = vld [vmem:[#allocation5 + $0x3d4] ss:$24 sps:$4 sm:$0xff]  }
 0x252   :  { %2592 = vmatprep.subr.bf16.mxu1 %v3663_v12  ;;  %v3748_v12 = vld [vmem:[#allocation5 + $0x250] ss:$24 sps:$4 sm:$0xff]  }
 0x253   :  { %2636 = vmatpush1.bf16.msra.mxu0 %v3658_v8  ;;  %v3756_v8 = vld [vmem:[#allocation5 + $0x224] ss:$24 sps:$4 sm:$0xff]  }
 0x254   :  { %2637 = vmatprep.subr.bf16.mxu0 %v3666_v13  ;;  %v3751_v13 = vld [vmem:[#allocation5 + $0x3d0] ss:$24 sps:$4 sm:$0xff]  }
 0x255   :  { %2593 = vmatpush1.bf16.msra.mxu1 %v3661_v61  ;;  %v3759_v61 = vld [vmem:[#allocation5 + $0x3a4] ss:$24 sps:$4 sm:$0xff]  }
 0x256   :  { %2594 = vmatprep.subr.bf16.mxu1 %v3669_v14  ;;  %v3762_v14 = vld [vmem:[#allocation5 + $0x1f4] ss:$24 sps:$4 sm:$0xff]  }
 0x257   :  { %2638 = vmatpush1.bf16.msra.mxu0 %v3664_v15  ;;  %v3757_v15 = vld [vmem:[#allocation5 + $0x3a0] ss:$24 sps:$4 sm:$0xff]  }
 0x258   :  { %2639 = vmatprep.subr.bf16.mxu0 %v3672_v16  ;;  %v3765_v16 = vld [vmem:[#allocation5 + $0x374] ss:$24 sps:$4 sm:$0xff]  }
 0x259   :  { %2595 = vmatpush1.bf16.msra.mxu1 %v3667_v17  ;;  %v3760_v17 = vld [vmem:[#allocation5 + $0x1f0] ss:$24 sps:$4 sm:$0xff]  }
 0x25a   :  { %2596 = vmatprep.subr.bf16.mxu1 %v3675_v18  ;;  %v3768_v18 = vld [vmem:[#allocation5 + $0x1c4] ss:$24 sps:$4 sm:$0xff]  }
 0x25b   :  { %2640 = vmatpush1.bf16.msra.mxu0 %v3670_v19  ;;  %v3763_v19 = vld [vmem:[#allocation5 + $0x370] ss:$24 sps:$4 sm:$0xff]  }
 0x25c   :  { %2641 = vmatprep.subr.bf16.mxu0 %v3678_v20  ;;  %v3771_v20 = vld [vmem:[#allocation5 + $0x344] ss:$24 sps:$4 sm:$0xff]  }
 0x25d   :  { %2597 = vmatpush1.bf16.msra.mxu1 %v3673_v21  ;;  %v3766_v21 = vld [vmem:[#allocation5 + $0x1c0] ss:$24 sps:$4 sm:$0xff]  }
 0x25e   :  { %2598 = vmatprep.subr.bf16.mxu1 %v3681_v22  ;;  %v3774_v22 = vld [vmem:[#allocation5 + $0x194] ss:$24 sps:$4 sm:$0xff]  }
 0x25f   :  { %2642 = vmatpush1.bf16.msra.mxu0 %v3676_v23  ;;  %v3769_v23 = vld [vmem:[#allocation5 + $0x340] ss:$24 sps:$4 sm:$0xff]  }
 0x260   :  { %2670 = vmatprep.subr.bf16.mxu0 %v3684_v24  ;;  %v3777_v24 = vld [vmem:[#allocation5 + $0x314] ss:$24 sps:$4 sm:$0xff]  }
 0x261   :  { %2599 = vmatpush1.bf16.msra.mxu1 %v3679_v25  ;;  %v3772_v25 = vld [vmem:[#allocation5 + $0x190] ss:$24 sps:$4 sm:$0xff]  }
 0x262   :  { %2660 = vmatmul.mubr.bf16.vlgmr.msra.gmra.mxu0 %v4020_v60  ;;  %2600 = vmatprep.subr.bf16.mxu1 %v3687_v26  ;;  %v3775_v26 = vld [vmem:[#allocation5 + $0x310] ss:$24 sps:$4 sm:$0xff]  }
 0x263   :  { %2671 = vmatpush1.bf16.msra.mxu0 %v3682_v27  ;;  %2702 = vmatprep.mubr.bf16.mxu0 %v4015_v53  ;;  %v3721_v53 = vld [vmem:[#allocation5 + $0x1b8] ss:$24 sps:$4 sm:$0xff]  }
 0x264   :  { %2672 = vmatprep.subr.bf16.mxu0 %v3690_v29  ;;  %v3778_v27 = vld [vmem:[%s4072_s7 + $0x38] sm:$0xff]   ;;  %v3859_v29 = vmov 0.0  }
 0x265   :  { %2601 = vmatpush2.bf16.msra.mxu1 %v3685_v30  ;;  %v3779_v30 = vld [vmem:[%s4072_s7 + $0x30] sm:$0xff]  }
 0x266   :  { %2602 = vmatprep.subr.bf16.mxu1 %v3693_v32  ;;  %v3782_v32 = vld [vmem:[%s4072_s7 + $0x18] sm:$0xff]  }
 0x267   :  { %2673 = vmatpush1.bf16.msra.mxu0 %v3688_v33  ;;  %v3783_v33 = vld [vmem:[%s4072_s7 + $0x10] sm:$0xff]  }
 0x268   :  { %2674 = vmatprep.subr.bf16.mxu0 %v3696_v35  ;;  %v3784_v35 = vld [vmem:[%s4072_s7 + $0x8] sm:$0xff]  }
 0x269   :  { %2603 = vmatpush2.bf16.msra.mxu1 %v3691_v36  ;;  %v3785_v36 = vld [vmem:[%s4072_s7] sm:$0xff]  }
 0x26a   :  { %2604 = vmatprep.subr.bf16.mxu1 %v3699_v37 }
 0x26b   :  { %2675 = vmatpush1.bf16.msra.mxu0 %v3694_v38 }
 0x26c   :  { %2676 = vmatprep.subr.bf16.mxu0 %v3702_v39 }
 0x26d   :  { %2605 = vmatpush2.bf16.msra.mxu1 %v3697_v40 }
 0x26e   :  { %2606 = vmatprep.subr.bf16.mxu1 %v3705_v41 }
 0x26f   :  { %2677 = vmatpush1.bf16.msra.mxu0 %v3700_v42 }
 0x270   :  { %2678 = vmatprep.subr.bf16.mxu0 %v3708_v43 }
 0x271   :  { %2607 = vmatpush2.bf16.msra.mxu1 %v3703_v44 }
 0x272   :  { %2608 = vmatprep.subr.bf16.mxu1 %v3711_v34 }
 0x273   :  { %2679 = vmatpush1.bf16.msra.mxu0 %v3706_v45 }
 0x274   :  { %2680 = vmatprep.subr.bf16.mxu0 %v3714_v46 }
 0x275   :  { %2609 = vmatpush2.bf16.msra.mxu1 %v3709_v47 }
 0x276   :  { %2610 = vmatprep.subr.bf16.mxu1 %v3717_v48 }
 0x277   :  { %2681 = vmatpush1.bf16.msra.mxu0 %v3712_v49 }
 0x278   :  { %2682 = vmatprep.subr.bf16.mxu0 %v3720_v28 }
 0x279   :  { %2611 = vmatpush2.bf16.msra.mxu1 %v3715_v31 }
 0x27a   :  { %2612 = vmatprep.subr.bf16.mxu1 %v3723_v50 }
 0x27b   :  { %2683 = vmatpush1.bf16.msra.mxu0 %v3718_v51 }
 0x27c   :  { %2684 = vmatprep.subr.bf16.mxu0 %v3726_v52 }
 0x27d   :  { %2613 = vmatpush2.bf16.msra.mxu1 %v3721_v53 }
 0x27e   :  { %2614 = vmatprep.subr.bf16.mxu1 %v3729_v54 }
 0x27f   :  { %2685 = vmatpush1.bf16.msra.mxu0 %v3724_v55 }
 0x280   :  { %2686 = vmatprep.subr.bf16.mxu0 %v3732_v57 }
 0x281   :  { %2615 = vmatpush2.bf16.msra.mxu1 %v3727_v58 }
 0x282   :  { %2713 = vmatprep.subr.bf16.mxu1 %v3735_v59 }
 0x283   :  { %2687 = vmatpush2.bf16.msra.mxu0 %v3730_v62 }
 0x284   :  { %2617 = vmatmul.mubr.bf16.vlgmr.msra.gmra.mxu1 %v4017_v56  ;;  %2688 = vmatprep.subr.bf16.mxu0 %v3738_v63 }
 0x285   :  { %2714 = vmatpush1.bf16.msra.mxu1 %v3733_v1  ;;  %2745 = vmatprep.mubr.bf16.mxu1 %v3858_v0  ;;  %v3754_v0 = vld [vmem:[#allocation5 + $0x220] ss:$24 sps:$4 sm:$0xff]  }
 0x286   :  { %2715 = vmatprep.subr.bf16.mxu1 %v3741_v2 }
 0x287   :  { %2689 = vmatpush2.bf16.msra.mxu0 %v3736_v4 }
 0x288   :  { %2690 = vmatprep.subr.bf16.mxu0 %v3744_v5 }
 0x289   :  { %2716 = vmatpush1.bf16.msra.mxu1 %v3739_v6 }
 0x28a   :  { %2717 = vmatprep.subr.bf16.mxu1 %v3747_v7 }
 0x28b   :  { %2691 = vmatpush2.bf16.msra.mxu0 %v3742_v9 }
 0x28c   :  { %2692 = vmatprep.subr.bf16.mxu0 %v3750_v10 }
 0x28d   :  { %2718 = vmatpush1.bf16.msra.mxu1 %v3745_v3 }
 0x28e   :  { %2719 = vmatprep.subr.bf16.mxu1 %v3753_v11 }
 0x28f   :  { %2693 = vmatpush2.bf16.msra.mxu0 %v3748_v12 }
 0x290   :  { %2694 = vmatprep.subr.bf16.mxu0 %v3756_v8 }
 0x291   :  { %2720 = vmatpush1.bf16.msra.mxu1 %v3751_v13 }
 0x292   :  { %2721 = vmatprep.subr.bf16.mxu1 %v3759_v61 }
 0x293   :  { %2695 = vmatpush2.bf16.msra.mxu0 %v3754_v0 }
 0x294   :  { %2696 = vmatprep.subr.bf16.mxu0 %v3762_v14 }
 0x295   :  { %2722 = vmatpush1.bf16.msra.mxu1 %v3757_v15 }
 0x296   :  { %2723 = vmatprep.subr.bf16.mxu1 %v3765_v16 }
 0x297   :  { %2697 = vmatpush2.bf16.msra.mxu0 %v3760_v17 }
 0x298   :  { %2698 = vmatprep.subr.bf16.mxu0 %v3768_v18 }
 0x299   :  { %2724 = vmatpush1.bf16.msra.mxu1 %v3763_v19 }
 0x29a   :  { %2725 = vmatprep.subr.bf16.mxu1 %v3771_v20 }
 0x29b   :  { %2699 = vmatpush2.bf16.msra.mxu0 %v3766_v21 }
 0x29c   :  { %2700 = vmatprep.subr.bf16.mxu0 %v3774_v22 }
 0x29d   :  { %2726 = vmatpush1.bf16.msra.mxu1 %v3769_v23 }
 0x29e   :  { %2727 = vmatprep.subr.bf16.mxu1 %v3777_v24 }
 0x29f   :  { %2701 = vmatpush2.bf16.msra.mxu0 %v3772_v25 }
 0x2a1   :  { %2728 = vmatpush1.bf16.msra.mxu1 %v3775_v26 }
 0x2a2   :  { %2703 = vmatmul.mubr.bf16.vlgmr.msra.gmra.mxu0 %v4017_v56  ;;  %3331 = vmatprep.subr.bf16.mxu1 %v3859_v29  ;;  %v3780_v56 = vld [vmem:[%s4072_s7 + $0x28] sm:$0xff]  }
 0x2a4   :  { %2746 = vmatmul.mubr.bf16.vlgmr.msra.gmra.mxu1 %v4020_v60  ;;  %v3781_v60 = vld [vmem:[%s4072_s7 + $0x20] sm:$0xff]  }
 0x2a5   :  { %3332 = vmatpush3.bf16.msra.mxu1 %v3778_v27  ;;  %3347 = vmatprep.mubr.msk.bf16.mxu1 %vm3860_vm4, %v3859_v29 }
 0x2a6   :  { %3333 = vmatprep.subr.bf16.mxu1 %v3859_v29 }
 0x2a9   :  { %3334 = vmatpush3.bf16.msra.mxu1 %v3779_v30  ;;  %v3246_v30 = vld [vmem:[%s4071_s6] ss:$0 sm:$0xff] }
 0x2aa   :  { %3335 = vmatprep.subr.bf16.mxu1 %v3859_v29 }
 0x2ad   :  { %3336 = vmatpush3.bf16.msra.mxu1 %v3780_v56 }
 0x2ae   :  { %3337 = vmatprep.subr.bf16.mxu1 %v3859_v29 }
 0x2b1   :  { %3338 = vmatpush3.bf16.msra.mxu1 %v3781_v60 }
 0x2b2   :  { %3339 = vmatprep.subr.bf16.mxu1 %v3859_v29 }
 0x2b5   :  { %3340 = vmatpush3.bf16.msra.mxu1 %v3782_v32 }
 0x2b6   :  { %3341 = vmatprep.subr.bf16.mxu1 %v3859_v29 }
 0x2b9   :  { %3342 = vmatpush3.bf16.msra.mxu1 %v3783_v33 }
 0x2ba   :  { %3343 = vmatprep.subr.bf16.mxu1 %v3859_v29 }
 0x2bd   :  { %3344 = vmatpush3.bf16.msra.mxu1 %v3784_v35  ;;  %v3247_v35 = vld [vmem:[%s4073_s8] ss:$0 sm:$0xff] }
 0x2be   :  { %3345 = vmatprep.subr.bf16.mxu1 %v3859_v29 }
 0x2c1   :  { %3346 = vmatpush3.bf16.msra.mxu1 %v3785_v36 }
 0x302   :  { %v2532_v37 = vpop.f32.mrf.mxu0 }
 0x304   :  { %v2575_v38 = vpop.f32.mrf.mxu1  ;;  %v2534_v39 = vpop.f32.mrf.mxu0 }
 0x305   :  { %v2576_v57 = vadd.f32 %v2575_v38, %v2532_v37 }
 0x306   :  { %v2577_v40 = vpop.f32.mrf.mxu1  ;;  %v2536_v41 = vpop.f32.mrf.mxu0 }
 0x307   :  { %v2578_v28 = vadd.f32 %v2577_v40, %v2534_v39 }
 0x308   :  { %v2579_v42 = vpop.f32.mrf.mxu1  ;;  %v2538_v43 = vpop.f32.mrf.mxu0 }
 0x309   :  { %v2757_v54 = vrot.slane %v2578_v28, 1  ;;  %v2580_v58 = vadd.f32 %v2579_v42, %v2536_v41 }
 0x30a   :  { %v2581_v44 = vpop.f32.mrf.mxu1 }
 0x30b   :  { %v2582_v31 = vadd.f32 %v2581_v44, %v2538_v43  ;;  %v2759_v6 = vadd.f32 %v2757_v54, %v2576_v57 }
 0x30d   :  { %v2777_v55 = vrot.slane %v2582_v31, 1 }
 0x30f   :  { %v2779_v7 = vadd.f32 %v2777_v55, %v2580_v58 }
 0x322   :  { %v2661_v34 = vpop.f32.mrf.mxu0 }
 0x324   :  { %v2663_v46 = vpop.f32.mrf.mxu0 }
 0x326   :  { %v2665_v48 = vpop.f32.mrf.mxu0 }
 0x328   :  { %v2667_v52 = vpop.f32.mrf.mxu0 }
 0x344   :  { %v2618_v45 = vpop.f32.mrf.mxu1 }
 0x345   :  { %v2662_v50 = vadd.f32 %v2661_v34, %v2618_v45 }
 0x346   :  { %v2620_v47 = vpop.f32.mrf.mxu1 }
 0x347   :  { %v2761_v62 = vrot.slane %v2662_v50, 2  ;;  %v2664_v63 = vadd.f32 %v2663_v46, %v2620_v47 }
 0x348   :  { %v2622_v49 = vpop.f32.mrf.mxu1 }
 0x349   :  { %v2666_v51 = vadd.f32 %v2665_v48, %v2622_v49  ;;  %v2763_v11 = vadd.f32 %v2761_v62, %v2759_v6  ;;  %v2765_v12 = vrot.slane %v2664_v63, 3 }
 0x34a   :  { %v2624_v53 = vpop.f32.mrf.mxu1 }
 0x34b   :  { %v2781_v1 = vrot.slane %v2666_v51, 2  ;;  %v2668_v2 = vadd.f32 %v2667_v52, %v2624_v53  ;;  %v2767_v18 = vadd.f32 %v2765_v12, %v2763_v11 }
 0x34d   :  { %v2783_v8 = vadd.f32 %v2781_v1, %v2779_v7  ;;  %v2785_v13 = vrot.slane %v2668_v2, 3 }
 0x34f   :  { %v2787_v19 = vadd.f32 %v2785_v13, %v2783_v8 }
 0x362   :  { %v2704_v59 = vpop.f32.mrf.mxu0 }
 0x364   :  { %v2747_v4 = vpop.f32.mrf.mxu1  ;;  %v2706_v5 = vpop.f32.mrf.mxu0 }
 0x365   :  { %v2748_v9 = vadd.f32 %v2747_v4, %v2704_v59 }
 0x366   :  { %v2749_v10 = vpop.f32.mrf.mxu1  ;;  %v2708_v3 = vpop.f32.mrf.mxu0 }
 0x367   :  { %v2769_v14 = vrot.slane %v2748_v9, 4  ;;  %v2750_v15 = vadd.f32 %v2749_v10, %v2706_v5 }
 0x368   :  { %v2751_v61 = vpop.f32.mrf.mxu1  ;;  %v2710_v0 = vpop.f32.mrf.mxu0 }
 0x369   :  { %v2752_v16 = vadd.f32 %v2751_v61, %v2708_v3  ;;  %v2771_v22 = vadd.f32 %v2769_v14, %v2767_v18  ;;  %v2773_v23 = vrot.slane %v2750_v15, 5 }
 0x36a   :  { %v2753_v17 = vpop.f32.mrf.mxu1 }
 0x36b   :  { %v2789_v20 = vrot.slane %v2752_v16, 4  ;;  %v2754_v21 = vadd.f32 %v2753_v17, %v2710_v0  ;;  %v2775_v27 = vadd.f32 %v2773_v23, %v2771_v22 }
 0x36d   :  { %v2791_v24 = vadd.f32 %v2789_v20, %v2787_v19  ;;  %v2793_v25 = vrot.slane %v2754_v21, 5 }
 0x36f   :  { %v2795_v26 = vadd.f32 %v2793_v25, %v2791_v24 }
 0x371   :  { %v2797_v29 = vrot.slane %v2795_v26, 1 }
 0x373   :  { %v2800_v56 = vsel %vm2799_vm5, %v2775_v27, %v2797_v29 }
 0x374   :  { %v2808_v60 = vadd.f32 %v3246_v30, %v2800_v56 }
 0x376   :  { %v2809_v32 = vmax.f32 %v2808_v60, 0.0 }
 0x378   :  { %v2810_v33 = vpack.c.bf16 %v2809_v32, %v2809_v32 }
 0x37a   :  { %3348 = vmatmul.mubr.bf16.vlgmr.msra.gmra.mxu1 %v2810_v33 }
 0x43a   :  { %v2916_v36 = vpop.f32.mrf.mxu1 }
 0x43b   :  { %v2917_v37 = vadd.f32 %v3247_v35, %v2916_v36 }
 0x43c   :  { %v3349_v38 = vpop.f32.mrf.mxu1 }
 0x43d   :  { %2922 = vst [vmem:[#allocation7] sm:$0x3] %v2917_v37 }
 0x43e   :  { %v2919_v39 = vpop.f32.mrf.mxu1 }
 0x43f   :  { %3837 = shalt.err (!%p3834_p0)
}
 0x440   :  { %2932 = dma.vmem_to_hbm [thread:$0]  %s2930_s15, 32, %s4074_s9, [#allocation4]   ;;  %v3350_v40 = vpop.f32.mrf.mxu1 }
 0x441   :  { %3850 = dma.done.wait [#allocation4], 32  }
 0x442   :  { %3851 = vsyncadd [#allocation4], 4294967264 }
 0x443   :  { %2936 = vsyncpa [#allocation3], 1 }
 0x444   :  { %2937 = vsyncpa [#allocation6], 1 }
 0x445   :  { %2938 = vsyncpa [#allocation4], 1 }

</bundles_post_ra>
